<compile_context>
chip_gen: v5e
topology: v5e:2x2
jax: 0.10.0
libtpu: 0.0.40
codegen_flags: <defaults>
</compile_context>

<pallas_src>
import functools
import math

import jax
import jax.numpy as jnp
from jax.experimental import pallas as pl
from jax.experimental.pallas import tpu as pltpu  # noqa: F401  (TPU backend)


# ----------------------------------------------------------------------------
# In-kernel helpers
# ----------------------------------------------------------------------------

def _layernorm(x, gamma, beta, eps=1e-6):
    """BERT4Rec-style LayerNorm: gamma*(x-mean)/(std+eps)+beta, unbiased std."""
    H = x.shape[-1]
    mean = jnp.mean(x, axis=-1, keepdims=True)
    d = x - mean
    var = jnp.sum(d * d, axis=-1, keepdims=True) * (1.0 / (H - 1))
    std = jnp.sqrt(var)
    return gamma * d * pl.reciprocal(std + eps, approx=True) + beta


def _masked_softmax(s, valid):
    """s: (B, Lq, Lk) f32 scores; valid: (B, Lk) f32 key validity (1 keep / 0 mask)."""
    s = jnp.where(valid[:, None, :] > 0.0, s, jnp.float32(-1e9))  # masked_fill(==0,-1e9)
    m = jnp.max(s, axis=-1, keepdims=True)
    e = jnp.exp(s - m)
    denom = jnp.sum(e, axis=-1, keepdims=True)
    return e * pl.reciprocal(denom, approx=True)


# ----------------------------------------------------------------------------
# Pallas kernels
# ----------------------------------------------------------------------------

def _attn_block_kernel(x_ref, valid_ref, ne_ref, nvalid_ref,
                       ln_g_ref, ln_b_ref, wqkv_ref, bqkv_ref,
                       wo_ref, bo_ref, o_ref, *, num_heads, num_neighbors):
    """Fused pre-LN + self-attn + neighbor cross-attn + out-proj + residual."""
    B, L, H = x_ref.shape
    dk = H // num_heads
    scale = 1.0 / math.sqrt(dk)
    N = num_neighbors
    Lk = ne_ref.shape[2]

    x2 = x_ref[...].reshape(B * L, H)                        # (B*L, H) f32
    xn2 = _layernorm(x2, ln_g_ref[...], ln_b_ref[...])       # (B*L, H) f32

    # Fused Q/K/V projection: one lane-dense (B*L, H) x (H, 3H) MXU matmul.
    bqkv = bqkv_ref[...]                                     # (1, 3H) f32
    qkv = jnp.dot(xn2.astype(jnp.bfloat16), wqkv_ref[...],
                  preferred_element_type=jnp.float32) + bqkv
    qkv = qkv.reshape(B, L, 3 * H)                           # (B, L, 3H) f32

    # One fused projection for ALL neighbor sequences (stacked).  The Q columns
    # of the result are unused; keeping the full 3H output avoids slicing the
    # bf16 weight ref.
    ne_flat = ne_ref[...].reshape(N * B * Lk, H).astype(jnp.bfloat16)
    nkv = jnp.dot(ne_flat, wqkv_ref[...],
                  preferred_element_type=jnp.float32) + bqkv
    nkv = nkv.reshape(N, B, Lk, 3 * H)                       # (N, B, Lk, 3H) f32

    valid_self = valid_ref[...]                              # (B, L) f32

    # Per-head attention (static unroll: heads share the single Q/K/V matmul and
    # the single weight load).  Self and the mean of the neighbor cross-
    # attentions are combined per head before the output projection, so Wo is
    # applied once per head (equivalent to concat-then-project).
    proj = jnp.zeros((B * L, H), jnp.float32)
    for h in range(num_heads):
        q_h = qkv[:, :, h * dk:(h + 1) * dk].astype(jnp.bfloat16)              # (B, L, dk)
        k_h = qkv[:, :, H + h * dk:H + (h + 1) * dk].astype(jnp.bfloat16)
        v_h = qkv[:, :, 2 * H + h * dk:2 * H + (h + 1) * dk].astype(jnp.bfloat16)

        # self-attention
        s = jnp.einsum('bqd,bkd->bqk', q_h, k_h,
                       preferred_element_type=jnp.float32) * scale
        p = _masked_softmax(s, valid_self).astype(jnp.bfloat16)
        ctx_h = jnp.einsum('bqk,bkd->bqd', p, v_h,
                           preferred_element_type=jnp.float32)                 # (B, L, dk) f32

        # neighbor cross-attention, mean-fused into the same context.
        # TODO(synk): exact neighbor-fusion rule of the repo's TransformerBlock
        # is unavailable; mean over per-neighbor cross-attention is used.
        for n in range(N):
            kn_h = nkv[n][:, :, H + h * dk:H + (h + 1) * dk].astype(jnp.bfloat16)
            vn_h = nkv[n][:, :, 2 * H + h * dk:2 * H + (h + 1) * dk].astype(jnp.bfloat16)
            sn = jnp.einsum('bqd,bkd->bqk', q_h, kn_h,
                            preferred_element_type=jnp.float32) * scale
            pn = _masked_softmax(sn, nvalid_ref[n]).astype(jnp.bfloat16)
            ctx_h = ctx_h + (1.0 / N) * jnp.einsum(
                'bqk,bkd->bqd', pn, vn_h, preferred_element_type=jnp.float32)

        wo_h = wo_ref[h * dk:(h + 1) * dk, :].astype(jnp.bfloat16)             # (dk, H)
        proj = proj + jnp.dot(ctx_h.reshape(B * L, dk).astype(jnp.bfloat16),
                              wo_h, preferred_element_type=jnp.float32)

    # self-attention and mean-cross-attention each contribute the output bias.
    bo_count = 2.0 if N > 0 else 1.0
    out2 = x2 + proj + bo_count * bo_ref[...]
    o_ref[...] = out2.reshape(B, L, H).astype(o_ref.dtype)


def _ffn_block_kernel(x_ref, ln_g_ref, ln_b_ref, w1_ref, b1_ref,
                      w2_ref, b2_ref, o_ref):
    """Fused pre-LN + Linear -> GELU(tanh) -> Linear + residual."""
    B, L, H = x_ref.shape
    x2 = x_ref[...].reshape(B * L, H)                        # f32
    xn2 = _layernorm(x2, ln_g_ref[...], ln_b_ref[...])
    h = jnp.dot(xn2.astype(jnp.bfloat16), w1_ref[...],
                preferred_element_type=jnp.float32) + b1_ref[...]
    c = math.sqrt(2.0 / math.pi)
    h = 0.5 * h * (1.0 + jnp.tanh(c * (h + 0.044715 * h * h * h)))   # BERT GELU (f32)
    o = jnp.dot(h.astype(jnp.bfloat16), w2_ref[...],
                preferred_element_type=jnp.float32) + b2_ref[...]
    o_ref[...] = (x2 + o).reshape(B, L, H).astype(o_ref.dtype)


# ----------------------------------------------------------------------------
# Wrappers calling pallas_call (whole batch in one block, no grid)
# ----------------------------------------------------------------------------

def attention_block(x, valid_self, neigh_em, valid_neigh, p, num_heads):
    B, L, H = x.shape
    N = neigh_em.shape[0]
    kernel = functools.partial(_attn_block_kernel,
                               num_heads=num_heads, num_neighbors=N)
    return pl.pallas_call(
        kernel,
        out_shape=jax.ShapeDtypeStruct((B, L, H), jnp.float32),
    )(x, valid_self, neigh_em, valid_neigh,
      p["ln1_g"], p["ln1_b"], p["wqkv"], p["bqkv"], p["wo"], p["bo"])


def ffn_block(x, p):
    B, L, H = x.shape
    return pl.pallas_call(
        _ffn_block_kernel,
        out_shape=jax.ShapeDtypeStruct((B, L, H), jnp.float32),
    )(x, p["ln2_g"], p["ln2_b"], p["w1"], p["b1"], p["w2"], p["b2"])


# ----------------------------------------------------------------------------
# Model glue (embedding, blocks, parameter init)
# ----------------------------------------------------------------------------

def bert_embedding(tokens, token_table, pos_table):
    # token embedding (padding_idx=0 -> row 0 is zero) + learned positional emb
    L = tokens.shape[-1]
    return jnp.take(token_table, tokens, axis=0) + pos_table[None, :L, :]


def transformer_block(x, valid_self, neigh_em, valid_neigh, p, num_heads):
    x = attention_block(x, valid_self, neigh_em, valid_neigh, p, num_heads)
    x = ffn_block(x, p)
    return x


def bert_forward(x_tokens, neighs, params, num_heads, vocab_size):
    B, L = x_tokens.shape
    N = neighs.shape[1]

    # key-validity vectors (mask built in-kernel; avoids O(L^2) mask DMA)
    valid_self = (x_tokens < vocab_size - 1).astype(jnp.float32)         # (B, L)
    neigh_tok = jnp.transpose(neighs, (1, 0, 2))                         # (N, B, L)
    valid_neigh = (neigh_tok < vocab_size - 1).astype(jnp.float32)       # (N, B, L)

    x = bert_embedding(x_tokens, params["token_emb"], params["pos_emb"])
    neigh_em = bert_embedding(neigh_tok.reshape(N * B, L),
                              params["token_emb"], params["pos_emb"])
    neigh_em = neigh_em.reshape(N, B, L, -1)                             # (N, B, L, H)

    for layer_p in params["layers"]:
        x = transformer_block(x, valid_self, neigh_em, valid_neigh,
                              layer_p, num_heads)
    return x


def init_params(key, vocab_size, hidden, n_layers, max_len):
    keys = jax.random.split(key, 2 + n_layers)
    scale = 0.02
    token_emb = scale * jax.random.normal(keys[0], (vocab_size, hidden), jnp.float32)
    token_emb = token_emb.at[0].set(0.0)                 # padding_idx=0
    pos_emb = scale * jax.random.normal(keys[1], (max_len, hidden), jnp.float32)

    layers = []
    for li in range(n_layers):
        lk = jax.random.split(keys[2 + li], 6)
        F = 4 * hidden
        wq = scale * jax.random.normal(lk[0], (hidden, hidden), jnp.float32)
        wk = scale * jax.random.normal(lk[1], (hidden, hidden), jnp.float32)
        wv = scale * jax.random.normal(lk[2], (hidden, hidden), jnp.float32)
        wo = scale * jax.random.normal(lk[3], (hidden, hidden), jnp.float32)
        w1 = scale * jax.random.normal(lk[4], (hidden, F), jnp.float32)
        w2 = scale * jax.random.normal(lk[5], (F, hidden), jnp.float32)
        layers.append(dict(
            ln1_g=jnp.ones((1, hidden), jnp.float32),
            ln1_b=jnp.zeros((1, hidden), jnp.float32),
            # fused QKV weight, bf16 MXU operands (f32 accumulation in-kernel)
            wqkv=jnp.concatenate([wq, wk, wv], axis=1).astype(jnp.bfloat16),
            bqkv=jnp.zeros((1, 3 * hidden), jnp.float32),
            # wo stays f32: it is row-sliced per head in-kernel and cast to bf16
            wo=wo,
            bo=jnp.zeros((1, hidden), jnp.float32),
            ln2_g=jnp.ones((1, hidden), jnp.float32),
            ln2_b=jnp.zeros((1, hidden), jnp.float32),
            w1=w1.astype(jnp.bfloat16),
            b1=jnp.zeros((1, F), jnp.float32),
            w2=w2.astype(jnp.bfloat16),
            b2=jnp.zeros((1, hidden), jnp.float32),
        ))
    return dict(token_emb=token_emb, pos_emb=pos_emb, layers=layers)


# ----------------------------------------------------------------------------
# Main
# ----------------------------------------------------------------------------

if __name__ == "__main__":
    # args: bert_max_len=8, bert_num_blocks=2, bert_num_heads=2,
    #       bert_hidden_units=32, num_items=20 (vocab_size=21), 2 neighbor seqs
    B, L, H, NUM_HEADS, N_LAYERS, N_NEIGH = 2, 8, 32, 2, 2, 2
    NUM_ITEMS = 20
    VOCAB = NUM_ITEMS + 1

    key = jax.random.PRNGKey(0)
    kx, kn, kp = jax.random.split(key, 3)
    x = jax.random.randint(kx, (B, L), 0, VOCAB, dtype=jnp.int32)
    neighs = jax.random.randint(kn, (B, N_NEIGH, L), 0, VOCAB, dtype=jnp.int32)

    params = init_params(kp, VOCAB, H, N_LAYERS, L)

    fwd = jax.jit(functools.partial(bert_forward,
                                    num_heads=NUM_HEADS, vocab_size=VOCAB))
    out = fwd(x, neighs, params)
    out = jax.block_until_ready(out)
    assert out.shape == (B, L, H)
    print("KERNEL_OK")
</pallas_src>

<mosaic_0001>
module attributes {stable_mosaic.version = 11 : i64} {
  func.func @_ffn_block_kernel(%arg0: memref<2x8x32xf32, #tpu.memory_space<vmem>>, %arg1: memref<1x32xf32, #tpu.memory_space<vmem>>, %arg2: memref<1x32xf32, #tpu.memory_space<vmem>>, %arg3: memref<32x128xbf16, #tpu.memory_space<vmem>>, %arg4: memref<1x128xf32, #tpu.memory_space<vmem>>, %arg5: memref<128x32xbf16, #tpu.memory_space<vmem>>, %arg6: memref<1x32xf32, #tpu.memory_space<vmem>>, %arg7: memref<2x8x32xf32, #tpu.memory_space<vmem>>) attributes {dimension_semantics = [], scalar_prefetch = 0 : i64, scratch_operands = 0 : i64, tpu.core_type = #tpu.core_type<tc>} {
    %c0 = arith.constant 0 : index
    %c0_0 = arith.constant 0 : index
    %c0_1 = arith.constant 0 : index
    %0 = vector.load %arg0[%c0, %c0_0, %c0_1] : memref<2x8x32xf32, #tpu.memory_space<vmem>>, vector<2x8x32xf32>
    %1 = vector.shape_cast %0 : vector<2x8x32xf32> to vector<16x32xf32>
    %c0_2 = arith.constant 0 : index
    %c0_3 = arith.constant 0 : index
    %2 = vector.load %arg1[%c0_2, %c0_3] : memref<1x32xf32, #tpu.memory_space<vmem>>, vector<1x32xf32>
    %c0_4 = arith.constant 0 : index
    %c0_5 = arith.constant 0 : index
    %3 = vector.load %arg2[%c0_4, %c0_5] : memref<1x32xf32, #tpu.memory_space<vmem>>, vector<1x32xf32>
    %cst = arith.constant dense<0.000000e+00> : vector<16xf32>
    %4 = vector.multi_reduction <add>, %1, %cst [1] : vector<16x32xf32> to vector<16xf32>
    %5 = vector.shape_cast %4 : vector<16xf32> to vector<16x1xf32>
    %cst_6 = arith.constant 3.200000e+01 : f32
    %6 = vector.broadcast %cst_6 : f32 to vector<16x1xf32>
    %7 = arith.divf %5, %6 : vector<16x1xf32>
    %8 = vector.broadcast %7 : vector<16x1xf32> to vector<16x32xf32>
    %9 = arith.subf %1, %8 : vector<16x32xf32>
    %10 = arith.mulf %9, %9 : vector<16x32xf32>
    %cst_7 = arith.constant dense<0.000000e+00> : vector<16xf32>
    %11 = vector.multi_reduction <add>, %10, %cst_7 [1] : vector<16x32xf32> to vector<16xf32>
    %12 = vector.shape_cast %11 : vector<16xf32> to vector<16x1xf32>
    %cst_8 = arith.constant 0.0322580636 : f32
    %13 = vector.broadcast %cst_8 : f32 to vector<16x1xf32>
    %14 = arith.mulf %12, %13 : vector<16x1xf32>
    %15 = math.sqrt %14 : vector<16x1xf32>
    %16 = vector.broadcast %2 : vector<1x32xf32> to vector<16x32xf32>
    %17 = arith.mulf %16, %9 : vector<16x32xf32>
    %cst_9 = arith.constant 9.99999997E-7 : f32
    %18 = vector.broadcast %cst_9 : f32 to vector<16x1xf32>
    %19 = arith.addf %15, %18 : vector<16x1xf32>
    %20 = tpu.reciprocal %19 {approx = true} : vector<16x1xf32> -> vector<16x1xf32>
    %21 = vector.broadcast %20 : vector<16x1xf32> to vector<16x32xf32>
    %22 = arith.mulf %17, %21 : vector<16x32xf32>
    %23 = vector.broadcast %3 : vector<1x32xf32> to vector<16x32xf32>
    %24 = arith.addf %22, %23 : vector<16x32xf32>
    %25 = arith.truncf %24 : vector<16x32xf32> to vector<16x32xbf16>
    %c0_10 = arith.constant 0 : index
    %c0_11 = arith.constant 0 : index
    %26 = vector.load %arg3[%c0_10, %c0_11] : memref<32x128xbf16, #tpu.memory_space<vmem>>, vector<32x128xbf16>
    %cst_12 = arith.constant dense<0.000000e+00> : vector<16x128xf32>
    %27 = tpu.matmul %25, %26, %cst_12 {dimension_numbers = #tpu.dot_dimension_numbers<[1], [0], [0], [1], [0, 0, 1, 1], [], []>} : vector<16x32xbf16>, vector<32x128xbf16>, vector<16x128xf32> -> vector<16x128xf32>
    %c0_13 = arith.constant 0 : index
    %c0_14 = arith.constant 0 : index
    %28 = vector.load %arg4[%c0_13, %c0_14] : memref<1x128xf32, #tpu.memory_space<vmem>>, vector<1x128xf32>
    %29 = vector.broadcast %28 : vector<1x128xf32> to vector<16x128xf32>
    %30 = arith.addf %27, %29 : vector<16x128xf32>
    %cst_15 = arith.constant 5.000000e-01 : f32
    %31 = vector.broadcast %cst_15 : f32 to vector<16x128xf32>
    %32 = arith.mulf %31, %30 : vector<16x128xf32>
    %cst_16 = arith.constant 4.471500e-02 : f32
    %33 = vector.broadcast %cst_16 : f32 to vector<16x128xf32>
    %34 = arith.mulf %33, %30 : vector<16x128xf32>
    %35 = arith.mulf %34, %30 : vector<16x128xf32>
    %36 = arith.mulf %35, %30 : vector<16x128xf32>
    %37 = arith.addf %30, %36 : vector<16x128xf32>
    %cst_17 = arith.constant 0.797884583 : f32
    %38 = vector.broadcast %cst_17 : f32 to vector<16x128xf32>
    %39 = arith.mulf %38, %37 : vector<16x128xf32>
    %40 = math.tanh %39 : vector<16x128xf32>
    %cst_18 = arith.constant 1.000000e+00 : f32
    %41 = vector.broadcast %cst_18 : f32 to vector<16x128xf32>
    %42 = arith.addf %41, %40 : vector<16x128xf32>
    %43 = arith.mulf %32, %42 : vector<16x128xf32>
    %44 = arith.truncf %43 : vector<16x128xf32> to vector<16x128xbf16>
    %c0_19 = arith.constant 0 : index
    %c0_20 = arith.constant 0 : index
    %45 = vector.load %arg5[%c0_19, %c0_20] : memref<128x32xbf16, #tpu.memory_space<vmem>>, vector<128x32xbf16>
    %cst_21 = arith.constant dense<0.000000e+00> : vector<16x32xf32>
    %46 = tpu.matmul %44, %45, %cst_21 {dimension_numbers = #tpu.dot_dimension_numbers<[1], [0], [0], [1], [0, 0, 1, 1], [], []>} : vector<16x128xbf16>, vector<128x32xbf16>, vector<16x32xf32> -> vector<16x32xf32>
    %c0_22 = arith.constant 0 : index
    %c0_23 = arith.constant 0 : index
    %47 = vector.load %arg6[%c0_22, %c0_23] : memref<1x32xf32, #tpu.memory_space<vmem>>, vector<1x32xf32>
    %48 = vector.broadcast %47 : vector<1x32xf32> to vector<16x32xf32>
    %49 = arith.addf %46, %48 : vector<16x32xf32>
    %50 = arith.addf %1, %49 : vector<16x32xf32>
    %51 = vector.shape_cast %50 : vector<16x32xf32> to vector<2x8x32xf32>
    %c0_24 = arith.constant 0 : index
    %c0_25 = arith.constant 0 : index
    %c0_26 = arith.constant 0 : index
    %52 = vector.load %arg7[%c0_24, %c0_25, %c0_26] : memref<2x8x32xf32, #tpu.memory_space<vmem>>, vector<2x8x32xf32>
    tpu.vector_store %arg7[%c0_24, %c0_25, %c0_26], %51 {strides = array<i32>} : memref<2x8x32xf32, #tpu.memory_space<vmem>>, vector<2x8x32xf32>,
    return
  }
}

module attributes {stable_mosaic.version = 11 : i64} {
  func.func @_ffn_block_kernel(%arg0: memref<2x8x32xf32, #tpu.memory_space<vmem>>, %arg1: memref<1x32xf32, #tpu.memory_space<vmem>>, %arg2: memref<1x32xf32, #tpu.memory_space<vmem>>, %arg3: memref<32x128xbf16, #tpu.memory_space<vmem>>, %arg4: memref<1x128xf32, #tpu.memory_space<vmem>>, %arg5: memref<128x32xbf16, #tpu.memory_space<vmem>>, %arg6: memref<1x32xf32, #tpu.memory_space<vmem>>, %arg7: memref<2x8x32xf32, #tpu.memory_space<vmem>>) attributes {dimension_semantics = [], scalar_prefetch = 0 : i64, scratch_operands = 0 : i64, tpu.core_type = #tpu.core_type<tc>} {
    %c0 = arith.constant 0 : index
    %c0_0 = arith.constant 0 : index
    %c0_1 = arith.constant 0 : index
    %0 = vector.load %arg0[%c0, %c0_0, %c0_1] : memref<2x8x32xf32, #tpu.memory_space<vmem>>, vector<2x8x32xf32>
    %1 = vector.shape_cast %0 : vector<2x8x32xf32> to vector<16x32xf32>
    %c0_2 = arith.constant 0 : index
    %c0_3 = arith.constant 0 : index
    %2 = vector.load %arg1[%c0_2, %c0_3] : memref<1x32xf32, #tpu.memory_space<vmem>>, vector<1x32xf32>
    %c0_4 = arith.constant 0 : index
    %c0_5 = arith.constant 0 : index
    %3 = vector.load %arg2[%c0_4, %c0_5] : memref<1x32xf32, #tpu.memory_space<vmem>>, vector<1x32xf32>
    %cst = arith.constant dense<0.000000e+00> : vector<16xf32>
    %4 = vector.multi_reduction <add>, %1, %cst [1] : vector<16x32xf32> to vector<16xf32>
    %5 = vector.shape_cast %4 : vector<16xf32> to vector<16x1xf32>
    %cst_6 = arith.constant 3.200000e+01 : f32
    %6 = vector.broadcast %cst_6 : f32 to vector<16x1xf32>
    %7 = arith.divf %5, %6 : vector<16x1xf32>
    %8 = vector.broadcast %7 : vector<16x1xf32> to vector<16x32xf32>
    %9 = arith.subf %1, %8 : vector<16x32xf32>
    %10 = arith.mulf %9, %9 : vector<16x32xf32>
    %cst_7 = arith.constant dense<0.000000e+00> : vector<16xf32>
    %11 = vector.multi_reduction <add>, %10, %cst_7 [1] : vector<16x32xf32> to vector<16xf32>
    %12 = vector.shape_cast %11 : vector<16xf32> to vector<16x1xf32>
    %cst_8 = arith.constant 0.0322580636 : f32
    %13 = vector.broadcast %cst_8 : f32 to vector<16x1xf32>
    %14 = arith.mulf %12, %13 : vector<16x1xf32>
    %15 = math.sqrt %14 : vector<16x1xf32>
    %16 = vector.broadcast %2 : vector<1x32xf32> to vector<16x32xf32>
    %17 = arith.mulf %16, %9 : vector<16x32xf32>
    %cst_9 = arith.constant 9.99999997E-7 : f32
    %18 = vector.broadcast %cst_9 : f32 to vector<16x1xf32>
    %19 = arith.addf %15, %18 : vector<16x1xf32>
    %20 = tpu.reciprocal %19 {approx = true} : vector<16x1xf32> -> vector<16x1xf32>
    %21 = vector.broadcast %20 : vector<16x1xf32> to vector<16x32xf32>
    %22 = arith.mulf %17, %21 : vector<16x32xf32>
    %23 = vector.broadcast %3 : vector<1x32xf32> to vector<16x32xf32>
    %24 = arith.addf %22, %23 : vector<16x32xf32>
    %25 = arith.truncf %24 : vector<16x32xf32> to vector<16x32xbf16>
    %c0_10 = arith.constant 0 : index
    %c0_11 = arith.constant 0 : index
    %26 = vector.load %arg3[%c0_10, %c0_11] : memref<32x128xbf16, #tpu.memory_space<vmem>>, vector<32x128xbf16>
    %cst_12 = arith.constant dense<0.000000e+00> : vector<16x128xf32>
    %27 = tpu.matmul %25, %26, %cst_12 {dimension_numbers = #tpu.dot_dimension_numbers<[1], [0], [0], [1], [0, 0, 1, 1], [], []>} : vector<16x32xbf16>, vector<32x128xbf16>, vector<16x128xf32> -> vector<16x128xf32>
    %c0_13 = arith.constant 0 : index
    %c0_14 = arith.constant 0 : index
    %28 = vector.load %arg4[%c0_13, %c0_14] : memref<1x128xf32, #tpu.memory_space<vmem>>, vector<1x128xf32>
    %29 = vector.broadcast %28 : vector<1x128xf32> to vector<16x128xf32>
    %30 = arith.addf %27, %29 : vector<16x128xf32>
    %cst_15 = arith.constant 5.000000e-01 : f32
    %31 = vector.broadcast %cst_15 : f32 to vector<16x128xf32>
    %32 = arith.mulf %31, %30 : vector<16x128xf32>
    %cst_16 = arith.constant 4.471500e-02 : f32
    %33 = vector.broadcast %cst_16 : f32 to vector<16x128xf32>
    %34 = arith.mulf %33, %30 : vector<16x128xf32>
    %35 = arith.mulf %34, %30 : vector<16x128xf32>
    %36 = arith.mulf %35, %30 : vector<16x128xf32>
    %37 = arith.addf %30, %36 : vector<16x128xf32>
    %cst_17 = arith.constant 0.797884583 : f32
    %38 = vector.broadcast %cst_17 : f32 to vector<16x128xf32>
    %39 = arith.mulf %38, %37 : vector<16x128xf32>
    %40 = math.tanh %39 : vector<16x128xf32>
    %cst_18 = arith.constant 1.000000e+00 : f32
    %41 = vector.broadcast %cst_18 : f32 to vector<16x128xf32>
    %42 = arith.addf %41, %40 : vector<16x128xf32>
    %43 = arith.mulf %32, %42 : vector<16x128xf32>
    %44 = arith.truncf %43 : vector<16x128xf32> to vector<16x128xbf16>
    %c0_19 = arith.constant 0 : index
    %c0_20 = arith.constant 0 : index
    %45 = vector.load %arg5[%c0_19, %c0_20] : memref<128x32xbf16, #tpu.memory_space<vmem>>, vector<128x32xbf16>
    %cst_21 = arith.constant dense<0.000000e+00> : vector<16x32xf32>
    %46 = tpu.matmul %44, %45, %cst_21 {dimension_numbers = #tpu.dot_dimension_numbers<[1], [0], [0], [1], [0, 0, 1, 1], [], []>} : vector<16x128xbf16>, vector<128x32xbf16>, vector<16x32xf32> -> vector<16x32xf32>
    %c0_22 = arith.constant 0 : index
    %c0_23 = arith.constant 0 : index
    %47 = vector.load %arg6[%c0_22, %c0_23] : memref<1x32xf32, #tpu.memory_space<vmem>>, vector<1x32xf32>
    %48 = vector.broadcast %47 : vector<1x32xf32> to vector<16x32xf32>
    %49 = arith.addf %46, %48 : vector<16x32xf32>
    %50 = arith.addf %1, %49 : vector<16x32xf32>
    %51 = vector.shape_cast %50 : vector<16x32xf32> to vector<2x8x32xf32>
    %c0_24 = arith.constant 0 : index
    %c0_25 = arith.constant 0 : index
    %c0_26 = arith.constant 0 : index
    %52 = vector.load %arg7[%c0_24, %c0_25, %c0_26] : memref<2x8x32xf32, #tpu.memory_space<vmem>>, vector<2x8x32xf32>
    tpu.vector_store %arg7[%c0_24, %c0_25, %c0_26], %51 {strides = array<i32>} : memref<2x8x32xf32, #tpu.memory_space<vmem>>, vector<2x8x32xf32>,
    return
  }
}

module attributes {stable_mosaic.version = 11 : i64} {
  func.func @_attn_block_kernel(%arg0: memref<2x8x32xf32, #tpu.memory_space<vmem>>, %arg1: memref<2x8xf32, #tpu.memory_space<vmem>>, %arg2: memref<2x2x8x32xf32, #tpu.memory_space<vmem>>, %arg3: memref<2x2x8xf32, #tpu.memory_space<vmem>>, %arg4: memref<1x32xf32, #tpu.memory_space<vmem>>, %arg5: memref<1x32xf32, #tpu.memory_space<vmem>>, %arg6: memref<32x96xbf16, #tpu.memory_space<vmem>>, %arg7: memref<1x96xf32, #tpu.memory_space<vmem>>, %arg8: memref<32x32xf32, #tpu.memory_space<vmem>>, %arg9: memref<1x32xf32, #tpu.memory_space<vmem>>, %arg10: memref<2x8x32xf32, #tpu.memory_space<vmem>>) attributes {dimension_semantics = [], scalar_prefetch = 0 : i64, scratch_operands = 0 : i64, tpu.core_type = #tpu.core_type<tc>} {
    %c0 = arith.constant 0 : index
    %c0_0 = arith.constant 0 : index
    %c0_1 = arith.constant 0 : index
    %0 = vector.load %arg0[%c0, %c0_0, %c0_1] : memref<2x8x32xf32, #tpu.memory_space<vmem>>, vector<2x8x32xf32>
    %1 = vector.shape_cast %0 : vector<2x8x32xf32> to vector<16x32xf32>
    %c0_2 = arith.constant 0 : index
    %c0_3 = arith.constant 0 : index
    %2 = vector.load %arg4[%c0_2, %c0_3] : memref<1x32xf32, #tpu.memory_space<vmem>>, vector<1x32xf32>
    %c0_4 = arith.constant 0 : index
    %c0_5 = arith.constant 0 : index
    %3 = vector.load %arg5[%c0_4, %c0_5] : memref<1x32xf32, #tpu.memory_space<vmem>>, vector<1x32xf32>
    %cst = arith.constant dense<0.000000e+00> : vector<16xf32>
    %4 = vector.multi_reduction <add>, %1, %cst [1] : vector<16x32xf32> to vector<16xf32>
    %5 = vector.shape_cast %4 : vector<16xf32> to vector<16x1xf32>
    %cst_6 = arith.constant 3.200000e+01 : f32
    %6 = vector.broadcast %cst_6 : f32 to vector<16x1xf32>
    %7 = arith.divf %5, %6 : vector<16x1xf32>
    %8 = vector.broadcast %7 : vector<16x1xf32> to vector<16x32xf32>
    %9 = arith.subf %1, %8 : vector<16x32xf32>
    %10 = arith.mulf %9, %9 : vector<16x32xf32>
    %cst_7 = arith.constant dense<0.000000e+00> : vector<16xf32>
    %11 = vector.multi_reduction <add>, %10, %cst_7 [1] : vector<16x32xf32> to vector<16xf32>
    %12 = vector.shape_cast %11 : vector<16xf32> to vector<16x1xf32>
    %cst_8 = arith.constant 0.0322580636 : f32
    %13 = vector.broadcast %cst_8 : f32 to vector<16x1xf32>
    %14 = arith.mulf %12, %13 : vector<16x1xf32>
    %15 = math.sqrt %14 : vector<16x1xf32>
    %16 = vector.broadcast %2 : vector<1x32xf32> to vector<16x32xf32>
    %17 = arith.mulf %16, %9 : vector<16x32xf32>
    %cst_9 = arith.constant 9.99999997E-7 : f32
    %18 = vector.broadcast %cst_9 : f32 to vector<16x1xf32>
    %19 = arith.addf %15, %18 : vector<16x1xf32>
    %20 = tpu.reciprocal %19 {approx = true} : vector<16x1xf32> -> vector<16x1xf32>
    %21 = vector.broadcast %20 : vector<16x1xf32> to vector<16x32xf32>
    %22 = arith.mulf %17, %21 : vector<16x32xf32>
    %23 = vector.broadcast %3 : vector<1x32xf32> to vector<16x32xf32>
    %24 = arith.addf %22, %23 : vector<16x32xf32>
    %c0_10 = arith.constant 0 : index
    %c0_11 = arith.constant 0 : index
    %25 = vector.load %arg7[%c0_10, %c0_11] : memref<1x96xf32, #tpu.memory_space<vmem>>, vector<1x96xf32>
    %26 = arith.truncf %24 : vector<16x32xf32> to vector<16x32xbf16>
    %c0_12 = arith.constant 0 : index
    %c0_13 = arith.constant 0 : index
    %27 = vector.load %arg6[%c0_12, %c0_13] : memref<32x96xbf16, #tpu.memory_space<vmem>>, vector<32x96xbf16>
    %cst_14 = arith.constant dense<0.000000e+00> : vector<16x96xf32>
    %28 = tpu.matmul %26, %27, %cst_14 {dimension_numbers = #tpu.dot_dimension_numbers<[1], [0], [0], [1], [0, 0, 1, 1], [], []>} : vector<16x32xbf16>, vector<32x96xbf16>, vector<16x96xf32> -> vector<16x96xf32>
    %29 = vector.broadcast %25 : vector<1x96xf32> to vector<16x96xf32>
    %30 = arith.addf %28, %29 : vector<16x96xf32>
    %31 = vector.shape_cast %30 : vector<16x96xf32> to vector<2x8x96xf32>
    %c0_15 = arith.constant 0 : index
    %c0_16 = arith.constant 0 : index
    %c0_17 = arith.constant 0 : index
    %c0_18 = arith.constant 0 : index
    %32 = vector.load %arg2[%c0_15, %c0_16, %c0_17, %c0_18] : memref<2x2x8x32xf32, #tpu.memory_space<vmem>>, vector<2x2x8x32xf32>
    %33 = vector.shape_cast %32 : vector<2x2x8x32xf32> to vector<32x32xf32>
    %34 = arith.truncf %33 : vector<32x32xf32> to vector<32x32xbf16>
    %c0_19 = arith.constant 0 : index
    %c0_20 = arith.constant 0 : index
    %35 = vector.load %arg6[%c0_19, %c0_20] : memref<32x96xbf16, #tpu.memory_space<vmem>>, vector<32x96xbf16>
    %cst_21 = arith.constant dense<0.000000e+00> : vector<32x96xf32>
    %36 = tpu.matmul %34, %35, %cst_21 {dimension_numbers = #tpu.dot_dimension_numbers<[1], [0], [0], [1], [0, 0, 1, 1], [], []>} : vector<32x32xbf16>, vector<32x96xbf16>, vector<32x96xf32> -> vector<32x96xf32>
    %37 = vector.broadcast %25 : vector<1x96xf32> to vector<32x96xf32>
    %38 = arith.addf %36, %37 : vector<32x96xf32>
    %39 = vector.shape_cast %38 : vector<32x96xf32> to vector<2x2x8x96xf32>
    %c0_22 = arith.constant 0 : index
    %c0_23 = arith.constant 0 : index
    %40 = vector.load %arg1[%c0_22, %c0_23] : memref<2x8xf32, #tpu.memory_space<vmem>>, vector<2x8xf32>
    %cst_24 = arith.constant 0.000000e+00 : f32
    %41 = vector.broadcast %cst_24 : f32 to vector<16x32xf32>
    %42 = vector.extract_strided_slice %31 {offsets = [0, 0, 0], sizes = [2, 8, 16], strides = [1, 1, 1]} : vector<2x8x96xf32> to vector<2x8x16xf32>
    %43 = arith.truncf %42 : vector<2x8x16xf32> to vector<2x8x16xbf16>
    %44 = vector.extract_strided_slice %31 {offsets = [0, 0, 32], sizes = [2, 8, 16], strides = [1, 1, 1]} : vector<2x8x96xf32> to vector<2x8x16xf32>
    %45 = arith.truncf %44 : vector<2x8x16xf32> to vector<2x8x16xbf16>
    %46 = vector.extract_strided_slice %31 {offsets = [0, 0, 64], sizes = [2, 8, 16], strides = [1, 1, 1]} : vector<2x8x96xf32> to vector<2x8x16xf32>
    %47 = arith.truncf %46 : vector<2x8x16xf32> to vector<2x8x16xbf16>
    "tpu.trace_start"() <{level = 10 : i32, message = "bqd,bkd->bqk"}> : () -> ()
    %cst_25 = arith.constant dense<0.000000e+00> : vector<2x8x8xf32>
    %48 = tpu.matmul %43, %45, %cst_25 {dimension_numbers = #tpu.dot_dimension_numbers<[2], [2], [1], [1], [0, 0, 0, 1, 1, 1], [0], [0]>} : vector<2x8x16xbf16>, vector<2x8x16xbf16>, vector<2x8x8xf32> -> vector<2x8x8xf32>
    "tpu.trace_stop"() : () -> ()
    %cst_26 = arith.constant 2.500000e-01 : f32
    %49 = vector.broadcast %cst_26 : f32 to vector<2x8x8xf32>
    %50 = arith.mulf %48, %49 : vector<2x8x8xf32>
    %51 = vector.shape_cast %40 : vector<2x8xf32> to vector<2x1x8xf32>
    %cst_27 = arith.constant 0.000000e+00 : f32
    %52 = vector.broadcast %cst_27 : f32 to vector<2x1x8xf32>
    %53 = arith.cmpf ogt, %51, %52 : vector<2x1x8xf32>
    %cst_28 = arith.constant -1.000000e+09 : f32
    %54 = vector.shape_cast %53 : vector<2x1x8xi1> to vector<2x1x8xi1>
    %55 = vector.broadcast %54 : vector<2x1x8xi1> to vector<2x8x8xi1>
    %56 = vector.broadcast %cst_28 : f32 to vector<2x8x8xf32>
    %57 = arith.select %55, %50, %56 : vector<2x8x8xi1>, vector<2x8x8xf32>
    %cst_29 = arith.constant dense<0xFF800000> : vector<2x8xf32>
    %58 = vector.multi_reduction <maximumf>, %57, %cst_29 [2] : vector<2x8x8xf32> to vector<2x8xf32>
    %59 = vector.shape_cast %58 : vector<2x8xf32> to vector<2x8x1xf32>
    %60 = vector.broadcast %59 : vector<2x8x1xf32> to vector<2x8x8xf32>
    %61 = arith.subf %57, %60 : vector<2x8x8xf32>
    %62 = math.exp %61 : vector<2x8x8xf32>
    %cst_30 = arith.constant dense<0.000000e+00> : vector<2x8xf32>
    %63 = vector.multi_reduction <add>, %62, %cst_30 [2] : vector<2x8x8xf32> to vector<2x8xf32>
    %64 = vector.shape_cast %63 : vector<2x8xf32> to vector<2x8x1xf32>
    %65 = tpu.reciprocal %64 {approx = true} : vector<2x8x1xf32> -> vector<2x8x1xf32>
    %66 = vector.broadcast %65 : vector<2x8x1xf32> to vector<2x8x8xf32>
    %67 = arith.mulf %62, %66 : vector<2x8x8xf32>
    %68 = arith.truncf %67 : vector<2x8x8xf32> to vector<2x8x8xbf16>
    "tpu.trace_start"() <{level = 10 : i32, message = "bqk,bkd->bqd"}> : () -> ()
    %cst_31 = arith.constant dense<0.000000e+00> : vector<2x8x16xf32>
    %69 = tpu.matmul %68, %47, %cst_31 {dimension_numbers = #tpu.dot_dimension_numbers<[2], [1], [1], [2], [0, 0, 0, 1, 1, 2], [0], [0]>} : vector<2x8x8xbf16>, vector<2x8x16xbf16>, vector<2x8x16xf32> -> vector<2x8x16xf32>
    "tpu.trace_stop"() : () -> ()
    %70 = vector.extract_strided_slice %39 {offsets = [0, 0, 0, 0], sizes = [1, 2, 8, 96], strides = [1, 1, 1, 1]} : vector<2x2x8x96xf32> to vector<1x2x8x96xf32>
    %71 = vector.shape_cast %70 : vector<1x2x8x96xf32> to vector<2x8x96xf32>
    %72 = vector.extract_strided_slice %71 {offsets = [0, 0, 32], sizes = [2, 8, 16], strides = [1, 1, 1]} : vector<2x8x96xf32> to vector<2x8x16xf32>
    %73 = arith.truncf %72 : vector<2x8x16xf32> to vector<2x8x16xbf16>
    %74 = vector.extract_strided_slice %39 {offsets = [0, 0, 0, 0], sizes = [1, 2, 8, 96], strides = [1, 1, 1, 1]} : vector<2x2x8x96xf32> to vector<1x2x8x96xf32>
    %75 = vector.shape_cast %74 : vector<1x2x8x96xf32> to vector<2x8x96xf32>
    %76 = vector.extract_strided_slice %75 {offsets = [0, 0, 64], sizes = [2, 8, 16], strides = [1, 1, 1]} : vector<2x8x96xf32> to vector<2x8x16xf32>
    %77 = arith.truncf %76 : vector<2x8x16xf32> to vector<2x8x16xbf16>
    "tpu.trace_start"() <{level = 10 : i32, message = "bqd,bkd->bqk"}> : () -> ()
    %cst_32 = arith.constant dense<0.000000e+00> : vector<2x8x8xf32>
    %78 = tpu.matmul %43, %73, %cst_32 {dimension_numbers = #tpu.dot_dimension_numbers<[2], [2], [1], [1], [0, 0, 0, 1, 1, 1], [0], [0]>} : vector<2x8x16xbf16>, vector<2x8x16xbf16>, vector<2x8x8xf32> -> vector<2x8x8xf32>
    "tpu.trace_stop"() : () -> ()
    %cst_33 = arith.constant 2.500000e-01 : f32
    %79 = vector.broadcast %cst_33 : f32 to vector<2x8x8xf32>
    %80 = arith.mulf %78, %79 : vector<2x8x8xf32>
    %c0_34 = arith.constant 0 : index
    %c0_35 = arith.constant 0 : index
    %c0_36 = arith.constant 0 : index
    %81 = vector.load %arg3[%c0_34, %c0_35, %c0_36] : memref<2x2x8xf32, #tpu.memory_space<vmem>>, vector<1x2x8xf32>
    %82 = vector.shape_cast %81 : vector<1x2x8xf32> to vector<2x8xf32>
    %83 = vector.shape_cast %82 : vector<2x8xf32> to vector<2x1x8xf32>
    %cst_37 = arith.constant 0.000000e+00 : f32
    %84 = vector.broadcast %cst_37 : f32 to vector<2x1x8xf32>
    %85 = arith.cmpf ogt, %83, %84 : vector<2x1x8xf32>
    %cst_38 = arith.constant -1.000000e+09 : f32
    %86 = vector.shape_cast %85 : vector<2x1x8xi1> to vector<2x1x8xi1>
    %87 = vector.broadcast %86 : vector<2x1x8xi1> to vector<2x8x8xi1>
    %88 = vector.broadcast %cst_38 : f32 to vector<2x8x8xf32>
    %89 = arith.select %87, %80, %88 : vector<2x8x8xi1>, vector<2x8x8xf32>
    %cst_39 = arith.constant dense<0xFF800000> : vector<2x8xf32>
    %90 = vector.multi_reduction <maximumf>, %89, %cst_39 [2] : vector<2x8x8xf32> to vector<2x8xf32>
    %91 = vector.shape_cast %90 : vector<2x8xf32> to vector<2x8x1xf32>
    %92 = vector.broadcast %91 : vector<2x8x1xf32> to vector<2x8x8xf32>
    %93 = arith.subf %89, %92 : vector<2x8x8xf32>
    %94 = math.exp %93 : vector<2x8x8xf32>
    %cst_40 = arith.constant dense<0.000000e+00> : vector<2x8xf32>
    %95 = vector.multi_reduction <add>, %94, %cst_40 [2] : vector<2x8x8xf32> to vector<2x8xf32>
    %96 = vector.shape_cast %95 : vector<2x8xf32> to vector<2x8x1xf32>
    %97 = tpu.reciprocal %96 {approx = true} : vector<2x8x1xf32> -> vector<2x8x1xf32>
    %98 = vector.broadcast %97 : vector<2x8x1xf32> to vector<2x8x8xf32>
    %99 = arith.mulf %94, %98 : vector<2x8x8xf32>
    %100 = arith.truncf %99 : vector<2x8x8xf32> to vector<2x8x8xbf16>
    "tpu.trace_start"() <{level = 10 : i32, message = "bqk,bkd->bqd"}> : () -> ()
    %cst_41 = arith.constant dense<0.000000e+00> : vector<2x8x16xf32>
    %101 = tpu.matmul %100, %77, %cst_41 {dimension_numbers = #tpu.dot_dimension_numbers<[2], [1], [1], [2], [0, 0, 0, 1, 1, 2], [0], [0]>} : vector<2x8x8xbf16>, vector<2x8x16xbf16>, vector<2x8x16xf32> -> vector<2x8x16xf32>
    "tpu.trace_stop"() : () -> ()
    %cst_42 = arith.constant 5.000000e-01 : f32
    %102 = vector.broadcast %cst_42 : f32 to vector<2x8x16xf32>
    %103 = arith.mulf %102, %101 : vector<2x8x16xf32>
    %104 = arith.addf %69, %103 : vector<2x8x16xf32>
    %105 = vector.extract_strided_slice %39 {offsets = [1, 0, 0, 0], sizes = [1, 2, 8, 96], strides = [1, 1, 1, 1]} : vector<2x2x8x96xf32> to vector<1x2x8x96xf32>
    %106 = vector.shape_cast %105 : vector<1x2x8x96xf32> to vector<2x8x96xf32>
    %107 = vector.extract_strided_slice %106 {offsets = [0, 0, 32], sizes = [2, 8, 16], strides = [1, 1, 1]} : vector<2x8x96xf32> to vector<2x8x16xf32>
    %108 = arith.truncf %107 : vector<2x8x16xf32> to vector<2x8x16xbf16>
    %109 = vector.extract_strided_slice %39 {offsets = [1, 0, 0, 0], sizes = [1, 2, 8, 96], strides = [1, 1, 1, 1]} : vector<2x2x8x96xf32> to vector<1x2x8x96xf32>
    %110 = vector.shape_cast %109 : vector<1x2x8x96xf32> to vector<2x8x96xf32>
    %111 = vector.extract_strided_slice %110 {offsets = [0, 0, 64], sizes = [2, 8, 16], strides = [1, 1, 1]} : vector<2x8x96xf32> to vector<2x8x16xf32>
    %112 = arith.truncf %111 : vector<2x8x16xf32> to vector<2x8x16xbf16>
    "tpu.trace_start"() <{level = 10 : i32, message = "bqd,bkd->bqk"}> : () -> ()
    %cst_43 = arith.constant dense<0.000000e+00> : vector<2x8x8xf32>
    %113 = tpu.matmul %43, %108, %cst_43 {dimension_numbers = #tpu.dot_dimension_numbers<[2], [2], [1], [1], [0, 0, 0, 1, 1, 1], [0], [0]>} : vector<2x8x16xbf16>, vector<2x8x16xbf16>, vector<2x8x8xf32> -> vector<2x8x8xf32>
    "tpu.trace_stop"() : () -> ()
    %cst_44 = arith.constant 2.500000e-01 : f32
    %114 = vector.broadcast %cst_44 : f32 to vector<2x8x8xf32>
    %115 = arith.mulf %113, %114 : vector<2x8x8xf32>
    %c1 = arith.constant 1 : index
    %c0_45 = arith.constant 0 : index
    %c0_46 = arith.constant 0 : index
    %116 = vector.load %arg3[%c1, %c0_45, %c0_46] : memref<2x2x8xf32, #tpu.memory_space<vmem>>, vector<1x2x8xf32>
    %117 = vector.shape_cast %116 : vector<1x2x8xf32> to vector<2x8xf32>
    %118 = vector.shape_cast %117 : vector<2x8xf32> to vector<2x1x8xf32>
    %cst_47 = arith.constant 0.000000e+00 : f32
    %119 = vector.broadcast %cst_47 : f32 to vector<2x1x8xf32>
    %120 = arith.cmpf ogt, %118, %119 : vector<2x1x8xf32>
    %cst_48 = arith.constant -1.000000e+09 : f32
    %121 = vector.shape_cast %120 : vector<2x1x8xi1> to vector<2x1x8xi1>
    %122 = vector.broadcast %121 : vector<2x1x8xi1> to vector<2x8x8xi1>
    %123 = vector.broadcast %cst_48 : f32 to vector<2x8x8xf32>
    %124 = arith.select %122, %115, %123 : vector<2x8x8xi1>, vector<2x8x8xf32>
    %cst_49 = arith.constant dense<0xFF800000> : vector<2x8xf32>
    %125 = vector.multi_reduction <maximumf>, %124, %cst_49 [2] : vector<2x8x8xf32> to vector<2x8xf32>
    %126 = vector.shape_cast %125 : vector<2x8xf32> to vector<2x8x1xf32>
    %127 = vector.broadcast %126 : vector<2x8x1xf32> to vector<2x8x8xf32>
    %128 = arith.subf %124, %127 : vector<2x8x8xf32>
    %129 = math.exp %128 : vector<2x8x8xf32>
    %cst_50 = arith.constant dense<0.000000e+00> : vector<2x8xf32>
    %130 = vector.multi_reduction <add>, %129, %cst_50 [2] : vector<2x8x8xf32> to vector<2x8xf32>
    %131 = vector.shape_cast %130 : vector<2x8xf32> to vector<2x8x1xf32>
    %132 = tpu.reciprocal %131 {approx = true} : vector<2x8x1xf32> -> vector<2x8x1xf32>
    %133 = vector.broadcast %132 : vector<2x8x1xf32> to vector<2x8x8xf32>
    %134 = arith.mulf %129, %133 : vector<2x8x8xf32>
    %135 = arith.truncf %134 : vector<2x8x8xf32> to vector<2x8x8xbf16>
    "tpu.trace_start"() <{level = 10 : i32, message = "bqk,bkd->bqd"}> : () -> ()
    %cst_51 = arith.constant dense<0.000000e+00> : vector<2x8x16xf32>
    %136 = tpu.matmul %135, %112, %cst_51 {dimension_numbers = #tpu.dot_dimension_numbers<[2], [1], [1], [2], [0, 0, 0, 1, 1, 2], [0], [0]>} : vector<2x8x8xbf16>, vector<2x8x16xbf16>, vector<2x8x16xf32> -> vector<2x8x16xf32>
    "tpu.trace_stop"() : () -> ()
    %cst_52 = arith.constant 5.000000e-01 : f32
    %137 = vector.broadcast %cst_52 : f32 to vector<2x8x16xf32>
    %138 = arith.mulf %137, %136 : vector<2x8x16xf32>
    %139 = arith.addf %104, %138 : vector<2x8x16xf32>
    %c0_53 = arith.constant 0 : index
    %c0_54 = arith.constant 0 : index
    %140 = vector.load %arg8[%c0_53, %c0_54] : memref<32x32xf32, #tpu.memory_space<vmem>>, vector<16x32xf32>
    %141 = arith.truncf %140 : vector<16x32xf32> to vector<16x32xbf16>
    %142 = vector.shape_cast %139 : vector<2x8x16xf32> to vector<16x16xf32>
    %143 = arith.truncf %142 : vector<16x16xf32> to vector<16x16xbf16>
    %cst_55 = arith.constant dense<0.000000e+00> : vector<16x32xf32>
    %144 = tpu.matmul %143, %141, %cst_55 {dimension_numbers = #tpu.dot_dimension_numbers<[1], [0], [0], [1], [0, 0, 1, 1], [], []>} : vector<16x16xbf16>, vector<16x32xbf16>, vector<16x32xf32> -> vector<16x32xf32>
    %145 = arith.addf %41, %144 : vector<16x32xf32>
    %146 = vector.extract_strided_slice %31 {offsets = [0, 0, 16], sizes = [2, 8, 16], strides = [1, 1, 1]} : vector<2x8x96xf32> to vector<2x8x16xf32>
    %147 = arith.truncf %146 : vector<2x8x16xf32> to vector<2x8x16xbf16>
    %148 = vector.extract_strided_slice %31 {offsets = [0, 0, 48], sizes = [2, 8, 16], strides = [1, 1, 1]} : vector<2x8x96xf32> to vector<2x8x16xf32>
    %149 = arith.truncf %148 : vector<2x8x16xf32> to vector<2x8x16xbf16>
    %150 = vector.extract_strided_slice %31 {offsets = [0, 0, 80], sizes = [2, 8, 16], strides = [1, 1, 1]} : vector<2x8x96xf32> to vector<2x8x16xf32>
    %151 = arith.truncf %150 : vector<2x8x16xf32> to vector<2x8x16xbf16>
    "tpu.trace_start"() <{level = 10 : i32, message = "bqd,bkd->bqk"}> : () -> ()
    %cst_56 = arith.constant dense<0.000000e+00> : vector<2x8x8xf32>
    %152 = tpu.matmul %147, %149, %cst_56 {dimension_numbers = #tpu.dot_dimension_numbers<[2], [2], [1], [1], [0, 0, 0, 1, 1, 1], [0], [0]>} : vector<2x8x16xbf16>, vector<2x8x16xbf16>, vector<2x8x8xf32> -> vector<2x8x8xf32>
    "tpu.trace_stop"() : () -> ()
    %cst_57 = arith.constant 2.500000e-01 : f32
    %153 = vector.broadcast %cst_57 : f32 to vector<2x8x8xf32>
    %154 = arith.mulf %152, %153 : vector<2x8x8xf32>
    %155 = vector.shape_cast %40 : vector<2x8xf32> to vector<2x1x8xf32>
    %cst_58 = arith.constant 0.000000e+00 : f32
    %156 = vector.broadcast %cst_58 : f32 to vector<2x1x8xf32>
    %157 = arith.cmpf ogt, %155, %156 : vector<2x1x8xf32>
    %cst_59 = arith.constant -1.000000e+09 : f32
    %158 = vector.shape_cast %157 : vector<2x1x8xi1> to vector<2x1x8xi1>
    %159 = vector.broadcast %158 : vector<2x1x8xi1> to vector<2x8x8xi1>
    %160 = vector.broadcast %cst_59 : f32 to vector<2x8x8xf32>
    %161 = arith.select %159, %154, %160 : vector<2x8x8xi1>, vector<2x8x8xf32>
    %cst_60 = arith.constant dense<0xFF800000> : vector<2x8xf32>
    %162 = vector.multi_reduction <maximumf>, %161, %cst_60 [2] : vector<2x8x8xf32> to vector<2x8xf32>
    %163 = vector.shape_cast %162 : vector<2x8xf32> to vector<2x8x1xf32>
    %164 = vector.broadcast %163 : vector<2x8x1xf32> to vector<2x8x8xf32>
    %165 = arith.subf %161, %164 : vector<2x8x8xf32>
    %166 = math.exp %165 : vector<2x8x8xf32>
    %cst_61 = arith.constant dense<0.000000e+00> : vector<2x8xf32>
    %167 = vector.multi_reduction <add>, %166, %cst_61 [2] : vector<2x8x8xf32> to vector<2x8xf32>
    %168 = vector.shape_cast %167 : vector<2x8xf32> to vector<2x8x1xf32>
    %169 = tpu.reciprocal %168 {approx = true} : vector<2x8x1xf32> -> vector<2x8x1xf32>
    %170 = vector.broadcast %169 : vector<2x8x1xf32> to vector<2x8x8xf32>
    %171 = arith.mulf %166, %170 : vector<2x8x8xf32>
    %172 = arith.truncf %171 : vector<2x8x8xf32> to vector<2x8x8xbf16>
    "tpu.trace_start"() <{level = 10 : i32, message = "bqk,bkd->bqd"}> : () -> ()
    %cst_62 = arith.constant dense<0.000000e+00> : vector<2x8x16xf32>
    %173 = tpu.matmul %172, %151, %cst_62 {dimension_numbers = #tpu.dot_dimension_numbers<[2], [1], [1], [2], [0, 0, 0, 1, 1, 2], [0], [0]>} : vector<2x8x8xbf16>, vector<2x8x16xbf16>, vector<2x8x16xf32> -> vector<2x8x16xf32>
    "tpu.trace_stop"() : () -> ()
    %174 = vector.extract_strided_slice %39 {offsets = [0, 0, 0, 0], sizes = [1, 2, 8, 96], strides = [1, 1, 1, 1]} : vector<2x2x8x96xf32> to vector<1x2x8x96xf32>
    %175 = vector.shape_cast %174 : vector<1x2x8x96xf32> to vector<2x8x96xf32>
    %176 = vector.extract_strided_slice %175 {offsets = [0, 0, 48], sizes = [2, 8, 16], strides = [1, 1, 1]} : vector<2x8x96xf32> to vector<2x8x16xf32>
    %177 = arith.truncf %176 : vector<2x8x16xf32> to vector<2x8x16xbf16>
    %178 = vector.extract_strided_slice %39 {offsets = [0, 0, 0, 0], sizes = [1, 2, 8, 96], strides = [1, 1, 1, 1]} : vector<2x2x8x96xf32> to vector<1x2x8x96xf32>
    %179 = vector.shape_cast %178 : vector<1x2x8x96xf32> to vector<2x8x96xf32>
    %180 = vector.extract_strided_slice %179 {offsets = [0, 0, 80], sizes = [2, 8, 16], strides = [1, 1, 1]} : vector<2x8x96xf32> to vector<2x8x16xf32>
    %181 = arith.truncf %180 : vector<2x8x16xf32> to vector<2x8x16xbf16>
    "tpu.trace_start"() <{level = 10 : i32, message = "bqd,bkd->bqk"}> : () -> ()
    %cst_63 = arith.constant dense<0.000000e+00> : vector<2x8x8xf32>
    %182 = tpu.matmul %147, %177, %cst_63 {dimension_numbers = #tpu.dot_dimension_numbers<[2], [2], [1], [1], [0, 0, 0, 1, 1, 1], [0], [0]>} : vector<2x8x16xbf16>, vector<2x8x16xbf16>, vector<2x8x8xf32> -> vector<2x8x8xf32>
    "tpu.trace_stop"() : () -> ()
    %cst_64 = arith.constant 2.500000e-01 : f32
    %183 = vector.broadcast %cst_64 : f32 to vector<2x8x8xf32>
    %184 = arith.mulf %182, %183 : vector<2x8x8xf32>
    %c0_65 = arith.constant 0 : index
    %c0_66 = arith.constant 0 : index
    %c0_67 = arith.constant 0 : index
    %185 = vector.load %arg3[%c0_65, %c0_66, %c0_67] : memref<2x2x8xf32, #tpu.memory_space<vmem>>, vector<1x2x8xf32>
    %186 = vector.shape_cast %185 : vector<1x2x8xf32> to vector<2x8xf32>
    %187 = vector.shape_cast %186 : vector<2x8xf32> to vector<2x1x8xf32>
    %cst_68 = arith.constant 0.000000e+00 : f32
    %188 = vector.broadcast %cst_68 : f32 to vector<2x1x8xf32>
    %189 = arith.cmpf ogt, %187, %188 : vector<2x1x8xf32>
    %cst_69 = arith.constant -1.000000e+09 : f32
    %190 = vector.shape_cast %189 : vector<2x1x8xi1> to vector<2x1x8xi1>
    %191 = vector.broadcast %190 : vector<2x1x8xi1> to vector<2x8x8xi1>
    %192 = vector.broadcast %cst_69 : f32 to vector<2x8x8xf32>
    %193 = arith.select %191, %184, %192 : vector<2x8x8xi1>, vector<2x8x8xf32>
    %cst_70 = arith.constant dense<0xFF800000> : vector<2x8xf32>
    %194 = vector.multi_reduction <maximumf>, %193, %cst_70 [2] : vector<2x8x8xf32> to vector<2x8xf32>
    %195 = vector.shape_cast %194 : vector<2x8xf32> to vector<2x8x1xf32>
    %196 = vector.broadcast %195 : vector<2x8x1xf32> to vector<2x8x8xf32>
    %197 = arith.subf %193, %196 : vector<2x8x8xf32>
    %198 = math.exp %197 : vector<2x8x8xf32>
    %cst_71 = arith.constant dense<0.000000e+00> : vector<2x8xf32>
    %199 = vector.multi_reduction <add>, %198, %cst_71 [2] : vector<2x8x8xf32> to vector<2x8xf32>
    %200 = vector.shape_cast %199 : vector<2x8xf32> to vector<2x8x1xf32>
    %201 = tpu.reciprocal %200 {approx = true} : vector<2x8x1xf32> -> vector<2x8x1xf32>
    %202 = vector.broadcast %201 : vector<2x8x1xf32> to vector<2x8x8xf32>
    %203 = arith.mulf %198, %202 : vector<2x8x8xf32>
    %204 = arith.truncf %203 : vector<2x8x8xf32> to vector<2x8x8xbf16>
    "tpu.trace_start"() <{level = 10 : i32, message = "bqk,bkd->bqd"}> : () -> ()
    %cst_72 = arith.constant dense<0.000000e+00> : vector<2x8x16xf32>
    %205 = tpu.matmul %204, %181, %cst_72 {dimension_numbers = #tpu.dot_dimension_numbers<[2], [1], [1], [2], [0, 0, 0, 1, 1, 2], [0], [0]>} : vector<2x8x8xbf16>, vector<2x8x16xbf16>, vector<2x8x16xf32> -> vector<2x8x16xf32>
    "tpu.trace_stop"() : () -> ()
    %cst_73 = arith.constant 5.000000e-01 : f32
    %206 = vector.broadcast %cst_73 : f32 to vector<2x8x16xf32>
    %207 = arith.mulf %206, %205 : vector<2x8x16xf32>
    %208 = arith.addf %173, %207 : vector<2x8x16xf32>
    %209 = vector.extract_strided_slice %39 {offsets = [1, 0, 0, 0], sizes = [1, 2, 8, 96], strides = [1, 1, 1, 1]} : vector<2x2x8x96xf32> to vector<1x2x8x96xf32>
    %210 = vector.shape_cast %209 : vector<1x2x8x96xf32> to vector<2x8x96xf32>
    %211 = vector.extract_strided_slice %210 {offsets = [0, 0, 48], sizes = [2, 8, 16], strides = [1, 1, 1]} : vector<2x8x96xf32> to vector<2x8x16xf32>
    %212 = arith.truncf %211 : vector<2x8x16xf32> to vector<2x8x16xbf16>
    %213 = vector.extract_strided_slice %39 {offsets = [1, 0, 0, 0], sizes = [1, 2, 8, 96], strides = [1, 1, 1, 1]} : vector<2x2x8x96xf32> to vector<1x2x8x96xf32>
    %214 = vector.shape_cast %213 : vector<1x2x8x96xf32> to vector<2x8x96xf32>
    %215 = vector.extract_strided_slice %214 {offsets = [0, 0, 80], sizes = [2, 8, 16], strides = [1, 1, 1]} : vector<2x8x96xf32> to vector<2x8x16xf32>
    %216 = arith.truncf %215 : vector<2x8x16xf32> to vector<2x8x16xbf16>
    "tpu.trace_start"() <{level = 10 : i32, message = "bqd,bkd->bqk"}> : () -> ()
    %cst_74 = arith.constant dense<0.000000e+00> : vector<2x8x8xf32>
    %217 = tpu.matmul %147, %212, %cst_74 {dimension_numbers = #tpu.dot_dimension_numbers<[2], [2], [1], [1], [0, 0, 0, 1, 1, 1], [0], [0]>} : vector<2x8x16xbf16>, vector<2x8x16xbf16>, vector<2x8x8xf32> -> vector<2x8x8xf32>
    "tpu.trace_stop"() : () -> ()
    %cst_75 = arith.constant 2.500000e-01 : f32
    %218 = vector.broadcast %cst_75 : f32 to vector<2x8x8xf32>
    %219 = arith.mulf %217, %218 : vector<2x8x8xf32>
    %c1_76 = arith.constant 1 : index
    %c0_77 = arith.constant 0 : index
    %c0_78 = arith.constant 0 : index
    %220 = vector.load %arg3[%c1_76, %c0_77, %c0_78] : memref<2x2x8xf32, #tpu.memory_space<vmem>>, vector<1x2x8xf32>
    %221 = vector.shape_cast %220 : vector<1x2x8xf32> to vector<2x8xf32>
    %222 = vector.shape_cast %221 : vector<2x8xf32> to vector<2x1x8xf32>
    %cst_79 = arith.constant 0.000000e+00 : f32
    %223 = vector.broadcast %cst_79 : f32 to vector<2x1x8xf32>
    %224 = arith.cmpf ogt, %222, %223 : vector<2x1x8xf32>
    %cst_80 = arith.constant -1.000000e+09 : f32
    %225 = vector.shape_cast %224 : vector<2x1x8xi1> to vector<2x1x8xi1>
    %226 = vector.broadcast %225 : vector<2x1x8xi1> to vector<2x8x8xi1>
    %227 = vector.broadcast %cst_80 : f32 to vector<2x8x8xf32>
    %228 = arith.select %226, %219, %227 : vector<2x8x8xi1>, vector<2x8x8xf32>
    %cst_81 = arith.constant dense<0xFF800000> : vector<2x8xf32>
    %229 = vector.multi_reduction <maximumf>, %228, %cst_81 [2] : vector<2x8x8xf32> to vector<2x8xf32>
    %230 = vector.shape_cast %229 : vector<2x8xf32> to vector<2x8x1xf32>
    %231 = vector.broadcast %230 : vector<2x8x1xf32> to vector<2x8x8xf32>
    %232 = arith.subf %228, %231 : vector<2x8x8xf32>
    %233 = math.exp %232 : vector<2x8x8xf32>
    %cst_82 = arith.constant dense<0.000000e+00> : vector<2x8xf32>
    %234 = vector.multi_reduction <add>, %233, %cst_82 [2] : vector<2x8x8xf32> to vector<2x8xf32>
    %235 = vector.shape_cast %234 : vector<2x8xf32> to vector<2x8x1xf32>
    %236 = tpu.reciprocal %235 {approx = true} : vector<2x8x1xf32> -> vector<2x8x1xf32>
    %237 = vector.broadcast %236 : vector<2x8x1xf32> to vector<2x8x8xf32>
    %238 = arith.mulf %233, %237 : vector<2x8x8xf32>
    %239 = arith.truncf %238 : vector<2x8x8xf32> to vector<2x8x8xbf16>
    "tpu.trace_start"() <{level = 10 : i32, message = "bqk,bkd->bqd"}> : () -> ()
    %cst_83 = arith.constant dense<0.000000e+00> : vector<2x8x16xf32>
    %240 = tpu.matmul %239, %216, %cst_83 {dimension_numbers = #tpu.dot_dimension_numbers<[2], [1], [1], [2], [0, 0, 0, 1, 1, 2], [0], [0]>} : vector<2x8x8xbf16>, vector<2x8x16xbf16>, vector<2x8x16xf32> -> vector<2x8x16xf32>
    "tpu.trace_stop"() : () -> ()
    %cst_84 = arith.constant 5.000000e-01 : f32
    %241 = vector.broadcast %cst_84 : f32 to vector<2x8x16xf32>
    %242 = arith.mulf %241, %240 : vector<2x8x16xf32>
    %243 = arith.addf %208, %242 : vector<2x8x16xf32>
    %c16 = arith.constant 16 : index
    %c0_85 = arith.constant 0 : index
    %244 = vector.load %arg8[%c16, %c0_85] : memref<32x32xf32, #tpu.memory_space<vmem>>, vector<16x32xf32>
    %245 = arith.truncf %244 : vector<16x32xf32> to vector<16x32xbf16>
    %246 = vector.shape_cast %243 : vector<2x8x16xf32> to vector<16x16xf32>
    %247 = arith.truncf %246 : vector<16x16xf32> to vector<16x16xbf16>
    %cst_86 = arith.constant dense<0.000000e+00> : vector<16x32xf32>
    %248 = tpu.matmul %247, %245, %cst_86 {dimension_numbers = #tpu.dot_dimension_numbers<[1], [0], [0], [1], [0, 0, 1, 1], [], []>} : vector<16x16xbf16>, vector<16x32xbf16>, vector<16x32xf32> -> vector<16x32xf32>
    %249 = arith.addf %145, %248 : vector<16x32xf32>
    %250 = arith.addf %1, %249 : vector<16x32xf32>
    %c0_87 = arith.constant 0 : index
    %c0_88 = arith.constant 0 : index
    %251 = vector.load %arg9[%c0_87, %c0_88] : memref<1x32xf32, #tpu.memory_space<vmem>>, vector<1x32xf32>
    %cst_89 = arith.constant 2.000000e+00 : f32
    %252 = vector.broadcast %cst_89 : f32 to vector<1x32xf32>
    %253 = arith.mulf %252, %251 : vector<1x32xf32>
    %254 = vector.broadcast %253 : vector<1x32xf32> to vector<16x32xf32>
    %255 = arith.addf %250, %254 : vector<16x32xf32>
    %256 = vector.shape_cast %255 : vector<16x32xf32> to vector<2x8x32xf32>
    %c0_90 = arith.constant 0 : index
    %c0_91 = arith.constant 0 : index
    %c0_92 = arith.constant 0 : index
    %257 = vector.load %arg10[%c0_90, %c0_91, %c0_92] : memref<2x8x32xf32, #tpu.memory_space<vmem>>, vector<2x8x32xf32>
    tpu.vector_store %arg10[%c0_90, %c0_91, %c0_92], %256 {strides = array<i32>} : memref<2x8x32xf32, #tpu.memory_space<vmem>>, vector<2x8x32xf32>,
    return
  }
}

</mosaic_0001>

<bundles_post_ra>
// kernel: bert_forward.5
= control target key start
LH: loop header
LB: loop body
LE: loop exit
PB: predicated region body
PF: predicated region fallthrough
CT: control target
= control target key end

     0   :  { %vm31_vm0 = vcmask 261120   ;;  %v316_v4 = vmov 32.0   ;;  %s428_s0 = inlined_call_operand.vmem [shape: f32[2,8,32], index: 0, kind: input, shape index: {}]   ;;  %s429_s1 = inlined_call_operand.vmem [shape: f32[1,32], index: 1, kind: input, shape index: {}]   ;;  %s430_s2 = inlined_call_operand.vmem [shape: f32[1,32], index: 2, kind: input, shape index: {}]   ;;  %s431_s4 = inlined_call_operand.vmem [shape: f32[1,128], index: 4, kind: input, shape index: {}]   ;;  %s432_s3 = inlined_call_operand.vmem [shape: bf16[32,128], index: 3, kind: input, shape index: {}]   ;;  %s433_s6 = inlined_call_operand.vmem [shape: f32[1,32], index: 6, kind: input, shape index: {}]   ;;  %s434_s5 = inlined_call_operand.vmem [shape: bf16[128,32], index: 5, kind: input, shape index: {}]   ;;  %s435_s7 = inlined_call_operand.vmem [shape: f32[2,8,32], index: 7, kind: output, shape index: {}]  }
   0x1   :  { %v360_v0 = vld [vmem:[%s428_s0] sm:$0xff]  ;;  %v367_v2 = vld [vmem:[%s428_s0 + $0x8] sm:$0xff]  ;;  %302 = vrcp.f32 %v316_v4  ;;  %v296_v60 = vld [vmem:[%s434_s5 + $0x38] sm:$0xff] }
   0x2   :  { %v32_v1 = vsel %vm31_vm0, %v360_v0, 0.0  ;;  %v35_v3 = vsel %vm31_vm0, %v367_v2, 0.0  ;;  %v298_v12 = vld [vmem:[%s429_s1] ss:$0 sm:$0xff]  ;;  %v288_v24 = vld [vmem:[%s432_s3 + $0x8] sm:$0xff]  ;;  %224 = vmatpush.bf16.msra.mxu1 %v296_v60  ;;  %v295_v61 = vld [vmem:[%s434_s5 + $0x30] sm:$0xff] }
   0x3   :  { %33 = vadd.xlane.f32.xlu0 %v32_v1  ;;  %129 = vmatpush.bf16.msra.mxu0 %v288_v24  ;;  %v287_v25 = vld [vmem:[%s432_s3] sm:$0xff]  ;;  %v294_v62 = vld [vmem:[%s434_s5 + $0x28] sm:$0xff]  ;;  %v292_v1 = vld [vmem:[%s434_s5 + $0x18] sm:$0xff] }
   0x4   :  { %v299_v54 = vld [vmem:[%s430_s2] ss:$0 sm:$0xff]  ;;  %v290_v4 = vld [vmem:[%s434_s5 + $0x8] sm:$0xff] }
   0x5   :  { %v293_v63 = vld [vmem:[%s434_s5 + $0x20] sm:$0xff] }
   0x6   :  { %225 = vmatpush.bf16.msra.mxu1 %v295_v61 }
   0x7   :  { %v303_v5 = vpop.eup %302  ;;  %130 = vmatpush.bf16.msra.mxu0 %v287_v25 }
   0x8   :  { %v39_v6 = vmul.f32 32.0, %v303_v5  ;;  %vm43_vm1 = vweird.f32 %v303_v5 }
   0xa   :  { %v40_v7 = vsub.f32 1.0, %v39_v6  ;;  %226 = vmatpush.bf16.msra.mxu1 %v294_v62  ;;  %v300_v6 = vld [vmem:[%s431_s4] ss:$0 sm:$0xff] }
   0xb   :  { %36 = vadd.xlane.f32.xlu0 %v35_v3  ;;  %v291_v3 = vld [vmem:[%s434_s5 + $0x10] sm:$0xff] }
   0xc   :  { %v41_v8 = vmul.f32 %v303_v5, %v40_v7 }
   0xe   :  { %v42_v9 = vadd.f32 %v303_v5, %v41_v8  ;;  %227 = vmatpush.bf16.msra.mxu1 %v293_v63 }
  0x10   :  { %v44_v10 = vsel %vm43_vm1, %v303_v5, %v42_v9  ;;  %v289_v5 = vld [vmem:[%s434_s5] sm:$0xff] }
  0x12   :  { %228 = vmatpush.bf16.msra.mxu1 %v292_v1 }
  0x16   :  { %229 = vmatpush.bf16.msra.mxu1 %v291_v3 }
  0x1a   :  { %230 = vmatpush.bf16.msra.mxu1 %v290_v4 }
  0x1e   :  { %231 = vmatpush.bf16.msra.mxu1 %v289_v5 }
  0x76   :  { %v34_v11 = vpop.xlane.xlu0 %33 }
  0x77   :  { %v45_v13 = vmul.f32 %v44_v10, %v34_v11 }
  0x79   :  { %v47_v14 = vsub.f32 %v360_v0, %v45_v13 }
  0x7b   :  { %v86_v15 = vmul.f32 %v298_v12, %v47_v14  ;;  %v49_v16 = vmul.f32 %v47_v14, %v47_v14 }
  0x7d   :  { %v51_v17 = vsel %vm31_vm0, %v49_v16, 0.0 }
  0x7e   :  { %52 = vadd.xlane.f32.xlu1 %v51_v17  ;;  %v37_v18 = vpop.xlane.xlu0 %36 }
  0x7f   :  { %v46_v19 = vmul.f32 %v44_v10, %v37_v18 }
  0x81   :  { %v48_v20 = vsub.f32 %v367_v2, %v46_v19 }
  0x83   :  { %v87_v21 = vmul.f32 %v298_v12, %v48_v20  ;;  %v50_v22 = vmul.f32 %v48_v20, %v48_v20 }
  0x85   :  { %v54_v23 = vsel %vm31_vm0, %v50_v22, 0.0 }
  0x86   :  { %55 = vadd.xlane.f32.xlu1 %v54_v23 }
  0xf1   :  { %v53_v26 = vpop.xlane.xlu1 %52 }
  0xf2   :  { %v57_v27 = vmul.f32 0.032258064, %v53_v26 }
  0xf4   :  { %304 = vrsqrt.f32 %v57_v27  ;;  %vm66_vm2 = vcmp.eq.f32.partialorder %v57_v27, inf  ;;  %v69_v40 = vand.u32 2147483648, %v57_v27  ;;  %vm68_vm3 = vcmp.eq.f32.partialorder %v57_v27, 0.0 }
  0xf9   :  { %v56_v28 = vpop.xlane.xlu1 %55 }
  0xfa   :  { %v305_v29 = vpop.eup %304  ;;  %v58_v30 = vmul.f32 0.032258064, %v56_v28 }
  0xfb   :  { %v60_v31 = vmul.f32 %v305_v29, %v57_v27 }
  0xfc   :  { %306 = vrsqrt.f32 %v58_v30  ;;  %vm78_vm4 = vcmp.eq.f32.partialorder %v58_v30, inf  ;;  %v81_v48 = vand.u32 2147483648, %v58_v30  ;;  %vm80_vm5 = vcmp.eq.f32.partialorder %v58_v30, 0.0 }
  0xfd   :  { %v61_v32 = vmul.f32 %v305_v29, %v60_v31 }
  0xff   :  { %v62_v33 = vmul.f32 0.5, %v61_v32 }
 0x101   :  { %v63_v34 = vsub.f32 1.5, %v62_v33 }
 0x102   :  { %v307_v35 = vpop.eup %306 }
 0x103   :  { %v72_v36 = vmul.f32 %v307_v35, %v58_v30  ;;  %v64_v37 = vmul.f32 %v305_v29, %v63_v34 }
 0x105   :  { %v73_v38 = vmul.f32 %v307_v35, %v72_v36  ;;  %v65_v39 = vmul.f32 %v64_v37, %v57_v27 }
 0x107   :  { %v74_v41 = vmul.f32 0.5, %v73_v38  ;;  %v67_v42 = vsel %vm66_vm2, %v57_v27, %v65_v39 }
 0x108   :  { %v70_v43 = vsel %vm68_vm3, %v69_v40, %v67_v42 }
 0x109   :  { %v75_v44 = vsub.f32 1.5, %v74_v41  ;;  %v88_v46 = vadd.f32 1e-06, %v70_v43 }
 0x10b   :  { %v76_v45 = vmul.f32 %v307_v35, %v75_v44  ;;  %308 = vrcp.f32 %v88_v46 }
 0x10d   :  { %v77_v47 = vmul.f32 %v76_v45, %v58_v30 }
 0x10f   :  { %v79_v49 = vsel %vm78_vm4, %v58_v30, %v77_v47  ;;  %v301_v30 = vld [vmem:[%s433_s6] ss:$0 sm:$0xff] }
 0x110   :  { %v82_v50 = vsel %vm80_vm5, %v81_v48, %v79_v49 }
 0x111   :  { %v89_v51 = vadd.f32 1e-06, %v82_v50  ;;  %v309_v52 = vpop.eup %308 }
 0x112   :  { %v92_v53 = vmul.f32 %v309_v52, %v86_v15 }
 0x113   :  { %310 = vrcp.f32 %v89_v51 }
 0x114   :  { %v97_v57 = vadd.f32 %v299_v54, %v92_v53 }
 0x119   :  { %v311_v55 = vpop.eup %310 }
 0x11a   :  { %v93_v56 = vmul.f32 %v311_v55, %v87_v21 }
 0x11c   :  { %v98_v58 = vadd.f32 %v299_v54, %v93_v56 }
 0x11e   :  { %v99_v59 = vpack.c.bf16 %v98_v58, %v97_v57 }
 0x120   :  { %254 = vmatmul.msk.bf16.vlgmr.msra.gmra.mxu0 %vm31_vm0, %v99_v59 }
 0x19d   :  { %v132_v7 = vpop.f32.mrf.mxu0 }
 0x19e   :  { %v133_v8 = vadd.f32 %v300_v6, %v132_v7 }
 0x1a0   :  { %v139_v9 = vmul.f32 0.044715, %v133_v8  ;;  %v137_v24 = vmul.f32 0.5, %v133_v8 }
 0x1a2   :  { %v141_v10 = vmul.f32 %v139_v9, %v133_v8 }
 0x1a4   :  { %v143_v11 = vmul.f32 %v141_v10, %v133_v8 }
 0x1a5   :  { %v134_v12 = vpop.f32.mrf.mxu0 }
 0x1a6   :  { %v135_v13 = vadd.f32 %v300_v6, %v134_v12  ;;  %v145_v14 = vadd.f32 %v143_v11, %v133_v8 }
 0x1a8   :  { %v140_v15 = vmul.f32 0.044715, %v135_v13  ;;  %v147_v17 = vmul.f32 0.7978846, %v145_v14  ;;  %v138_v25 = vmul.f32 0.5, %v135_v13 }
 0x1aa   :  { %v142_v16 = vmul.f32 %v140_v15, %v135_v13  ;;  %312 = vtanh.f32 %v147_v17 }
 0x1ac   :  { %v144_v18 = vmul.f32 %v142_v16, %v135_v13 }
 0x1ae   :  { %v146_v19 = vadd.f32 %v144_v18, %v135_v13 }
 0x1b0   :  { %v148_v20 = vmul.f32 0.7978846, %v146_v19  ;;  %v313_v21 = vpop.eup %312 }
 0x1b1   :  { %v151_v22 = vadd.f32 1.0, %v313_v21 }
 0x1b2   :  { %314 = vtanh.f32 %v148_v20 }
 0x1b3   :  { %v153_v27 = vmul.f32 %v151_v22, %v137_v24 }
 0x1b8   :  { %v315_v23 = vpop.eup %314 }
 0x1b9   :  { %v152_v26 = vadd.f32 1.0, %v315_v23 }
 0x1bb   :  { %v154_v28 = vmul.f32 %v152_v26, %v138_v25 }
 0x1bd   :  { %v155_v29 = vpack.c.bf16 %v154_v28, %v153_v27 }
 0x1bf   :  { %232 = vmatmul.bf16.vlgmr.msra.gmra.mxu1 %v155_v29 }
 0x23c   :  { %v233_v31 = vpop.f32.mrf.mxu1 }
 0x23d   :  { %v234_v32 = vadd.f32 %v301_v30, %v233_v31 }
 0x23f   :  { %v238_v33 = vadd.f32 %v234_v32, %v360_v0 }
 0x241   :  { %240 = vst.msk [vmem:[%s435_s7] sm:$0xff] %vm31_vm0, %v238_v33 }
 0x244   :  { %v235_v34 = vpop.f32.mrf.mxu1 }
 0x245   :  { %v236_v35 = vadd.f32 %v301_v30, %v235_v34 }
 0x247   :  { %v239_v36 = vadd.f32 %v236_v35, %v367_v2 }
 0x249   :  { %241 = vst.msk [vmem:[%s435_s7 + $0x8] sm:$0xff] %vm31_vm0, %v239_v36 }

// kernel: bert_forward.7
= control target key start
LH: loop header
LB: loop body
LE: loop exit
PB: predicated region body
PF: predicated region fallthrough
CT: control target
= control target key end

     0   :  { %vm32_vm0 = vcmask 261120   ;;  %s472_s0 = inlined_call_operand.vmem [shape: f32[2,8,32], index: 0, kind: input, shape index: {}]   ;;  %s473_s1 = inlined_call_operand.vmem [shape: f32[1,32], index: 1, kind: input, shape index: {}]   ;;  %s474_s2 = inlined_call_operand.vmem [shape: f32[1,32], index: 2, kind: input, shape index: {}]   ;;  %s475_s3 = inlined_call_operand.vmem [shape: bf16[32,128], index: 3, kind: input, shape index: {}]   ;;  %s476_s4 = inlined_call_operand.vmem [shape: f32[1,128], index: 4, kind: input, shape index: {}]   ;;  %s477_s5 = inlined_call_operand.vmem [shape: bf16[128,32], index: 5, kind: input, shape index: {}]   ;;  %s478_s6 = inlined_call_operand.vmem [shape: f32[1,32], index: 6, kind: input, shape index: {}]   ;;  %s479_s7 = inlined_call_operand.hbm [shape: f32[2,8,32], index: 7, kind: output, shape index: {}]  }
   0x1   :  { %v407_v0 = vld [vmem:[%s472_s0] sm:$0xff] }
   0x2   :  { %v33_v1 = vsel %vm32_vm0, %v407_v0, 0.0 }
   0x3   :  { %34 = vadd.xlane.f32.xlu0 %v33_v1 }
   0x4   :  { %12 = vsyncpa [#allocation3], 0  ;;  %v414_v2 = vld [vmem:[%s472_s0 + $0x8] sm:$0xff]  ;;  %v360_v4 = vmov 32.0   ;;  %v302_v22 = vld [vmem:[%s475_s3] sm:$0xff]  ;;  %s361_s27 = smov [#allocation2]  }
   0x5   :  { %v36_v3 = vsel %vm32_vm0, %v414_v2, 0.0  ;;  %320 = vrcp.f32 %v360_v4  ;;  %v303_v21 = vld [vmem:[%s475_s3 + $0x8] sm:$0xff]  ;;  %v316_v49 = vld [vmem:[%s473_s1] ss:$0 sm:$0xff]  ;;  %v311_v60 = vld [vmem:[%s477_s5 + $0x38] sm:$0xff]  ;;  %s247_s0 = sshll.u32 %s361_s27, 4  ;;  %s248_s0 = int_to_ptr.vmem [resolvable:$true] %s247_s0 }
   0x6   :  { %130 = vmatpush.bf16.msra.mxu0 %v303_v21  ;;  %v317_v54 = vld [vmem:[%s474_s2] ss:$0 sm:$0xff]  ;;  %225 = vmatpush.bf16.msra.mxu1 %v311_v60  ;;  %v310_v61 = vld [vmem:[%s477_s5 + $0x30] sm:$0xff]  ;;  %v309_v62 = vld [vmem:[%s477_s5 + $0x28] sm:$0xff]  ;;  %s249_s30 = sshll.u32 %s479_s7, 4  ;;  %s363_s3 = smov 8   ;;  %s250_s30 = int_to_ptr.hbm [resolvable:$true] %s249_s30 }
   0x7   :  { %v308_v63 = vld [vmem:[%s477_s5 + $0x20] sm:$0xff]  ;;  %v307_v1 = vld [vmem:[%s477_s5 + $0x18] sm:$0xff]  ;;  %v305_v4 = vld [vmem:[%s477_s5 + $0x8] sm:$0xff] }
   0xa   :  { %131 = vmatpush.bf16.msra.mxu0 %v302_v22  ;;  %226 = vmatpush.bf16.msra.mxu1 %v310_v61 }
   0xb   :  { %37 = vadd.xlane.f32.xlu0 %v36_v3  ;;  %v321_v5 = vpop.eup %320  ;;  %v306_v3 = vld [vmem:[%s477_s5 + $0x10] sm:$0xff] }
   0xc   :  { %v40_v6 = vmul.f32 32.0, %v321_v5  ;;  %vm44_vm1 = vweird.f32 %v321_v5 }
   0xe   :  { %v41_v7 = vsub.f32 1.0, %v40_v6  ;;  %227 = vmatpush.bf16.msra.mxu1 %v309_v62  ;;  %v318_v6 = vld [vmem:[%s476_s4] ss:$0 sm:$0xff] }
  0x10   :  { %v42_v8 = vmul.f32 %v321_v5, %v41_v7 }
  0x12   :  { %v43_v9 = vadd.f32 %v321_v5, %v42_v8  ;;  %228 = vmatpush.bf16.msra.mxu1 %v308_v63 }
  0x14   :  { %v45_v10 = vsel %vm44_vm1, %v321_v5, %v43_v9  ;;  %v304_v5 = vld [vmem:[%s477_s5] sm:$0xff] }
  0x16   :  { %229 = vmatpush.bf16.msra.mxu1 %v307_v1 }
  0x1a   :  { %230 = vmatpush.bf16.msra.mxu1 %v306_v3 }
  0x1e   :  { %231 = vmatpush.bf16.msra.mxu1 %v305_v4 }
  0x22   :  { %232 = vmatpush.bf16.msra.mxu1 %v304_v5 }
  0x76   :  { %v35_v11 = vpop.xlane.xlu0 %34 }
  0x77   :  { %v46_v12 = vmul.f32 %v45_v10, %v35_v11 }
  0x79   :  { %v48_v13 = vsub.f32 %v407_v0, %v46_v12 }
  0x7b   :  { %v50_v14 = vmul.f32 %v48_v13, %v48_v13  ;;  %v87_v51 = vmul.f32 %v316_v49, %v48_v13 }
  0x7d   :  { %v52_v15 = vsel %vm32_vm0, %v50_v14, 0.0 }
  0x7e   :  { %53 = vadd.xlane.f32.xlu1 %v52_v15  ;;  %v38_v16 = vpop.xlane.xlu0 %37 }
  0x7f   :  { %v47_v17 = vmul.f32 %v45_v10, %v38_v16 }
  0x81   :  { %v49_v18 = vsub.f32 %v414_v2, %v47_v17 }
  0x83   :  { %v51_v19 = vmul.f32 %v49_v18, %v49_v18  ;;  %v88_v52 = vmul.f32 %v316_v49, %v49_v18 }
  0x85   :  { %v55_v20 = vsel %vm32_vm0, %v51_v19, 0.0 }
  0x86   :  { %56 = vadd.xlane.f32.xlu1 %v55_v20 }
  0xf1   :  { %v54_v23 = vpop.xlane.xlu1 %53 }
  0xf2   :  { %v58_v24 = vmul.f32 0.032258064, %v54_v23 }
  0xf4   :  { %322 = vrsqrt.f32 %v58_v24  ;;  %vm67_vm2 = vcmp.eq.f32.partialorder %v58_v24, inf  ;;  %v70_v37 = vand.u32 2147483648, %v58_v24  ;;  %vm69_vm3 = vcmp.eq.f32.partialorder %v58_v24, 0.0 }
  0xf9   :  { %v57_v25 = vpop.xlane.xlu1 %56 }
  0xfa   :  { %v323_v26 = vpop.eup %322  ;;  %v59_v27 = vmul.f32 0.032258064, %v57_v25 }
  0xfb   :  { %v61_v28 = vmul.f32 %v323_v26, %v58_v24 }
  0xfc   :  { %324 = vrsqrt.f32 %v59_v27  ;;  %vm79_vm4 = vcmp.eq.f32.partialorder %v59_v27, inf  ;;  %v82_v45 = vand.u32 2147483648, %v59_v27  ;;  %vm81_vm5 = vcmp.eq.f32.partialorder %v59_v27, 0.0 }
  0xfd   :  { %v62_v29 = vmul.f32 %v323_v26, %v61_v28 }
  0xff   :  { %v63_v30 = vmul.f32 0.5, %v62_v29 }
 0x101   :  { %v64_v31 = vsub.f32 1.5, %v63_v30  ;;  %v319_v30 = vld [vmem:[%s478_s6] ss:$0 sm:$0xff]  ;;  %s362_s6 = smov 128  }
 0x102   :  { %v325_v32 = vpop.eup %324 }
 0x103   :  { %v73_v33 = vmul.f32 %v325_v32, %v59_v27  ;;  %v65_v34 = vmul.f32 %v323_v26, %v64_v31 }
 0x105   :  { %v74_v35 = vmul.f32 %v325_v32, %v73_v33  ;;  %v66_v36 = vmul.f32 %v65_v34, %v58_v24 }
 0x107   :  { %v75_v38 = vmul.f32 0.5, %v74_v35  ;;  %v68_v39 = vsel %vm67_vm2, %v58_v24, %v66_v36 }
 0x108   :  { %v71_v40 = vsel %vm69_vm3, %v70_v37, %v68_v39 }
 0x109   :  { %v76_v41 = vsub.f32 1.5, %v75_v38  ;;  %v89_v43 = vadd.f32 1e-06, %v71_v40 }
 0x10b   :  { %v77_v42 = vmul.f32 %v325_v32, %v76_v41  ;;  %326 = vrcp.f32 %v89_v43 }
 0x10d   :  { %v78_v44 = vmul.f32 %v77_v42, %v59_v27 }
 0x10f   :  { %v80_v46 = vsel %vm79_vm4, %v59_v27, %v78_v44 }
 0x110   :  { %v83_v47 = vsel %vm81_vm5, %v82_v45, %v80_v46 }
 0x111   :  { %v90_v48 = vadd.f32 1e-06, %v83_v47  ;;  %v327_v50 = vpop.eup %326 }
 0x112   :  { %v93_v53 = vmul.f32 %v327_v50, %v87_v51 }
 0x113   :  { %328 = vrcp.f32 %v90_v48 }
 0x114   :  { %v98_v57 = vadd.f32 %v317_v54, %v93_v53 }
 0x119   :  { %v329_v55 = vpop.eup %328 }
 0x11a   :  { %v94_v56 = vmul.f32 %v329_v55, %v88_v52 }
 0x11c   :  { %v99_v58 = vadd.f32 %v317_v54, %v94_v56 }
 0x11e   :  { %v100_v59 = vpack.c.bf16 %v99_v58, %v98_v57 }
 0x120   :  { %269 = vmatmul.msk.bf16.vlgmr.msra.gmra.mxu0 %vm32_vm0, %v100_v59 }
 0x19d   :  { %v133_v7 = vpop.f32.mrf.mxu0 }
 0x19e   :  { %v134_v8 = vadd.f32 %v318_v6, %v133_v7 }
 0x1a0   :  { %v140_v9 = vmul.f32 0.044715, %v134_v8  ;;  %v138_v24 = vmul.f32 0.5, %v134_v8 }
 0x1a2   :  { %v142_v10 = vmul.f32 %v140_v9, %v134_v8 }
 0x1a4   :  { %v144_v11 = vmul.f32 %v142_v10, %v134_v8 }
 0x1a5   :  { %v135_v12 = vpop.f32.mrf.mxu0 }
 0x1a6   :  { %v136_v13 = vadd.f32 %v318_v6, %v135_v12  ;;  %v146_v14 = vadd.f32 %v144_v11, %v134_v8 }
 0x1a8   :  { %v141_v15 = vmul.f32 0.044715, %v136_v13  ;;  %v148_v17 = vmul.f32 0.7978846, %v146_v14  ;;  %v139_v25 = vmul.f32 0.5, %v136_v13 }
 0x1aa   :  { %v143_v16 = vmul.f32 %v141_v15, %v136_v13  ;;  %330 = vtanh.f32 %v148_v17 }
 0x1ac   :  { %v145_v18 = vmul.f32 %v143_v16, %v136_v13 }
 0x1ae   :  { %v147_v19 = vadd.f32 %v145_v18, %v136_v13 }
 0x1b0   :  { %v149_v20 = vmul.f32 0.7978846, %v147_v19  ;;  %v331_v21 = vpop.eup %330 }
 0x1b1   :  { %v152_v22 = vadd.f32 1.0, %v331_v21 }
 0x1b2   :  { %332 = vtanh.f32 %v149_v20 }
 0x1b3   :  { %v154_v27 = vmul.f32 %v152_v22, %v138_v24 }
 0x1b8   :  { %v333_v23 = vpop.eup %332 }
 0x1b9   :  { %v153_v26 = vadd.f32 1.0, %v333_v23 }
 0x1bb   :  { %v155_v28 = vmul.f32 %v153_v26, %v139_v25 }
 0x1bd   :  { %v156_v29 = vpack.c.bf16 %v155_v28, %v154_v27 }
 0x1bf   :  { %233 = vmatmul.bf16.vlgmr.msra.gmra.mxu1 %v156_v29 }
 0x23c   :  { %v234_v31 = vpop.f32.mrf.mxu1 }
 0x23d   :  { %v235_v32 = vadd.f32 %v319_v30, %v234_v31 }
 0x23f   :  { %v239_v33 = vadd.f32 %v235_v32, %v407_v0 }
 0x241   :  { %241 = vst.msk [vmem:[#allocation2] sm:$0xff] %vm32_vm0, %v239_v33 }
 0x244   :  { %v236_v34 = vpop.f32.mrf.mxu1 }
 0x245   :  { %v237_v35 = vadd.f32 %v319_v30, %v236_v34 }
 0x247   :  { %v240_v36 = vadd.f32 %v237_v35, %v414_v2 }
 0x249   :  { %242 = vst.msk [vmem:[#allocation2 + $0x8] sm:$0xff] %vm32_vm0, %v240_v36 }
 0x24a   :  { %255 = dma.vmem_to_hbm [thread:$0]  %s248_s0, 256, %s250_s30, [#allocation3], %s362_s6, %s362_s6, %s363_s3  }
 0x24b   :  { %358 = dma.done.wait [#allocation3], 256  }
 0x24c   :  { %359 = vsyncadd [#allocation3], 4294967040 }
 0x24d   :  { %260 = vsyncpa [#allocation3], 1 }

// kernel: bert_forward.4
= control target key start
LH: loop header
LB: loop body
LE: loop exit
PB: predicated region body
PF: predicated region fallthrough
CT: control target
= control target key end

     0   :  { %vm40_vm0 = vcmask 261120   ;;  %v1097_v4 = vmov 32.0   ;;  %vm185_vm6 = vcmask 130048   ;;  %vm244_vm9 = vcmask 64512   ;;  %s1102_s16 = smov 112   ;;  %s1103_s21 = smov 48   ;;  %s1462_s0 = inlined_call_operand.vmem [shape: f32[2,8,32], index: 0, kind: input, shape index: {}]   ;;  %s1463_s4 = inlined_call_operand.vmem [shape: f32[1,32], index: 4, kind: input, shape index: {}]   ;;  %s1464_s6 = inlined_call_operand.vmem [shape: bf16[32,96], index: 6, kind: input, shape index: {}]   ;;  %s1465_s2 = inlined_call_operand.vmem [shape: f32[2,2,8,32], index: 2, kind: input, shape index: {}]   ;;  %s1466_s7 = inlined_call_operand.vmem [shape: f32[1,96], index: 7, kind: input, shape index: {}]   ;;  %s1467_s5 = inlined_call_operand.vmem [shape: f32[1,32], index: 5, kind: input, shape index: {}]   ;;  %s1468_s3 = inlined_call_operand.vmem [shape: f32[2,2,8], index: 3, kind: input, shape index: {}]   ;;  %s1469_s1 = inlined_call_operand.vmem [shape: f32[2,8], index: 1, kind: input, shape index: {}]   ;;  %s1470_s8 = inlined_call_operand.vmem [shape: f32[32,32], index: 8, kind: input, shape index: {}]   ;;  %s1471_s9 = inlined_call_operand.vmem [shape: f32[1,32], index: 9, kind: input, shape index: {}]   ;;  %s1472_s10 = inlined_call_operand.vmem [shape: f32[2,8,32], index: 10, kind: output, shape index: {}]  }
   0x1   :  { %v36_v0 = vld [vmem:[%s1462_s0] sm:$0xff]  ;;  %v37_v2 = vld [vmem:[%s1462_s0 + $0x8] sm:$0xff]  ;;  %1037 = vrcp.f32 %v1097_v4  ;;  %vm358_vm14 = vcmask 1043456  }
   0x2   :  { %v41_v1 = vsel %vm40_vm0, %v36_v0, 0.0  ;;  %v44_v3 = vsel %vm40_vm0, %v37_v2, 0.0  ;;  %v1026_v7 = vld [vmem:[%s1464_s6 + $0x8] sm:$0xff]  ;;  %v1025_v9 = vld [vmem:[%s1464_s6] sm:$0xff] }
   0x3   :  { %42 = vadd.xlane.f32.xlu0 %v41_v1  ;;  %164 = vmatpush.bf16.msra.mxu1 %v1026_v7  ;;  %v146_v10 = vld [vmem:[%s1465_s2] sm:$0xff]  ;;  %v147_v11 = vld [vmem:[%s1465_s2 + $0x8] sm:$0xff] }
   0x4   :  { %138 = vmatpush.bf16.msra.mxu0 %v1026_v7  ;;  %v150_v12 = vpack.c.bf16 %v147_v11, %v146_v10  ;;  %v1034_v17 = vld [vmem:[%s1463_s4] ss:$0 sm:$0xff]  ;;  %s1098_s4 = smov 96  }
   0x5   :  { %v1188_v29 = vld [vmem:[%s1466_s7] ss:$0 sm:$0xff] }
   0x6   :  { %v1036_v63 = vld [vmem:[%s1467_s5] ss:$0 sm:$0xff] }
   0x7   :  { %v1038_v5 = vpop.eup %1037  ;;  %165 = vmatpush.bf16.msra.mxu1 %v1025_v9 }
   0x8   :  { %v48_v6 = vmul.f32 32.0, %v1038_v5  ;;  %139 = vmatpush.bf16.msra.mxu0 %v1025_v9  ;;  %vm52_vm1 = vweird.f32 %v1038_v5 }
   0xa   :  { %v49_v8 = vsub.f32 1.0, %v48_v6  ;;  %995 = vmatmul.msk.bf16.vlgmr.msra.gmra.mxu1 %vm40_vm0, %v150_v12 }
   0xb   :  { %45 = vadd.xlane.f32.xlu0 %v44_v3 }
   0xc   :  { %v50_v13 = vmul.f32 %v1038_v5, %v49_v8 }
   0xe   :  { %v51_v14 = vadd.f32 %v1038_v5, %v50_v13 }
  0x10   :  { %v53_v15 = vsel %vm52_vm1, %v1038_v5, %v51_v14 }
  0x76   :  { %v43_v16 = vpop.xlane.xlu0 %42 }
  0x77   :  { %v54_v18 = vmul.f32 %v53_v15, %v43_v16 }
  0x79   :  { %v56_v19 = vsub.f32 %v36_v0, %v54_v18 }
  0x7b   :  { %v95_v20 = vmul.f32 %v1034_v17, %v56_v19  ;;  %v58_v21 = vmul.f32 %v56_v19, %v56_v19  ;;  %v148_v19 = vld [vmem:[%s1465_s2 + $0x10] sm:$0xff] }
  0x7d   :  { %v60_v22 = vsel %vm40_vm0, %v58_v21, 0.0 }
  0x7e   :  { %61 = vadd.xlane.f32.xlu1 %v60_v22  ;;  %v46_v23 = vpop.xlane.xlu0 %45 }
  0x7f   :  { %v55_v24 = vmul.f32 %v53_v15, %v46_v23 }
  0x81   :  { %v57_v25 = vsub.f32 %v37_v2, %v55_v24 }
  0x83   :  { %v96_v26 = vmul.f32 %v1034_v17, %v57_v25  ;;  %v59_v27 = vmul.f32 %v57_v25, %v57_v25  ;;  %v315_v25 = vld [vmem:[%s1468_s3] sm:$0x3] }
  0x84   :  { %vm319_vm7 = vcmp.gt.f32.partialorder %v315_v25, 0.0 }
  0x85   :  { %v63_v28 = vsel %vm40_vm0, %v59_v27, 0.0 }
  0x86   :  { %64 = vadd.xlane.f32.xlu1 %v63_v28  ;;  %v1099_v28 = vmov 0  }
  0x87   :  { %v167_v30 = vpop.f32.mrf.mxu1 }
  0x88   :  { %v168_v31 = vadd.f32 %v1188_v29, %v167_v30  ;;  %v321_v30 = vsel %vm319_vm7, 1, %v1099_v28 }
  0x8a   :  { %v269_v32 = vpack.c.bf16 %v168_v31, %v168_v31  ;;  %v323_v31 = vperm.slane %v321_v30, 0 }
  0x8c   :  { %v272_v34 = vunpack.c.l.b16 %v269_v32  ;;  %vm325_vm8 = vcmp.eq.s32.totalorder %v323_v31, 1 }
  0x8e   :  { %v1191_v36 = vpack.c.b16 %v272_v34, %v272_v34 }
  0x8f   :  { %v169_v7 = vpop.f32.mrf.mxu1 }
  0x90   :  { %274 = vrot.lane.b32.xlu0 %v1191_v36, %s1098_s4  ;;  %v170_v10 = vadd.f32 %v1188_v29, %v169_v7 }
  0x92   :  { %v270_v13 = vpack.c.bf16 %v170_v10, %v170_v10 }
  0x94   :  { %v293_v15 = vunpack.c.l.b16 %v270_v13 }
  0x96   :  { %v1211_v16 = vpack.c.b16 %v293_v15, %v293_v15 }
  0xf1   :  { %v62_v33 = vpop.xlane.xlu1 %61 }
  0xf2   :  { %v66_v35 = vmul.f32 0.032258064, %v62_v33 }
  0xf4   :  { %1039 = vrsqrt.f32 %v66_v35  ;;  %vm75_vm2 = vcmp.eq.f32.partialorder %v66_v35, inf  ;;  %v78_v49 = vand.u32 2147483648, %v66_v35  ;;  %vm77_vm3 = vcmp.eq.f32.partialorder %v66_v35, 0.0 }
  0xf9   :  { %v65_v37 = vpop.xlane.xlu1 %64 }
  0xfa   :  { %v1040_v38 = vpop.eup %1039  ;;  %v67_v39 = vmul.f32 0.032258064, %v65_v37 }
  0xfb   :  { %v69_v40 = vmul.f32 %v1040_v38, %v66_v35 }
  0xfc   :  { %1041 = vrsqrt.f32 %v67_v39  ;;  %vm87_vm4 = vcmp.eq.f32.partialorder %v67_v39, inf  ;;  %v90_v57 = vand.u32 2147483648, %v67_v39  ;;  %vm89_vm5 = vcmp.eq.f32.partialorder %v67_v39, 0.0 }
  0xfd   :  { %v70_v41 = vmul.f32 %v1040_v38, %v69_v40 }
  0xff   :  { %v71_v42 = vmul.f32 0.5, %v70_v41  ;;  %v317_v41 = vrot.slane %v315_v25, 1 }
 0x101   :  { %v72_v43 = vsub.f32 1.5, %v71_v42  ;;  %vm320_vm10 = vcmp.gt.f32.partialorder %v317_v41, 0.0 }
 0x102   :  { %v1042_v44 = vpop.eup %1041  ;;  %v275_v5 = vpop.permute.xlu0 %274 }
 0x103   :  { %v81_v45 = vmul.f32 %v1042_v44, %v67_v39  ;;  %v73_v46 = vmul.f32 %v1040_v38, %v72_v43  ;;  %v277_v6 = vsel %vm185_vm6, %v275_v5, 0  ;;  %v322_v43 = vsel %vm320_vm10, 1, %v1099_v28 }
 0x104   :  { %286 = vmatpush.bf16.xpose.msrb.mxu0 %v277_v6 }
 0x105   :  { %v82_v47 = vmul.f32 %v1042_v44, %v81_v45  ;;  %v74_v48 = vmul.f32 %v73_v46, %v66_v35  ;;  %v324_v46 = vperm.slane %v322_v43, 0 }
 0x107   :  { %v76_v50 = vsel %vm75_vm2, %v66_v35, %v74_v48  ;;  %v83_v51 = vmul.f32 0.5, %v82_v47  ;;  %vm326_vm11 = vcmp.eq.s32.totalorder %v324_v46, 1 }
 0x108   :  { %v79_v52 = vsel %vm77_vm3, %v78_v49, %v76_v50 }
 0x109   :  { %v84_v53 = vsub.f32 1.5, %v83_v51  ;;  %v97_v55 = vadd.f32 1e-06, %v79_v52 }
 0x10b   :  { %v85_v54 = vmul.f32 %v1042_v44, %v84_v53  ;;  %1043 = vrcp.f32 %v97_v55 }
 0x10d   :  { %v86_v56 = vmul.f32 %v85_v54, %v67_v39 }
 0x10f   :  { %v88_v58 = vsel %vm87_vm4, %v67_v39, %v86_v56 }
 0x110   :  { %v91_v59 = vsel %vm89_vm5, %v90_v57, %v88_v58 }
 0x111   :  { %v98_v60 = vadd.f32 1e-06, %v91_v59  ;;  %v1044_v61 = vpop.eup %1043 }
 0x112   :  { %v101_v62 = vmul.f32 %v1044_v61, %v95_v20  ;;  %v149_v20 = vld [vmem:[%s1465_s2 + $0x18] sm:$0xff]  ;;  %s1100_s2 = smov 64  }
 0x113   :  { %1045 = vrcp.f32 %v98_v60  ;;  %v151_v22 = vpack.c.bf16 %v149_v20, %v148_v19 }
 0x114   :  { %v106_v2 = vadd.f32 %v1036_v63, %v101_v62 }
 0x115   :  { %996 = vmatmul.msk.bf16.gmra.mxu1 %vm40_vm0, %v151_v22 }
 0x119   :  { %v1046_v0 = vpop.eup %1045 }
 0x11a   :  { %v102_v1 = vmul.f32 %v1046_v0, %v96_v26 }
 0x11c   :  { %v107_v3 = vadd.f32 %v1036_v63, %v102_v1 }
 0x11e   :  { %v109_v4 = vpack.c.bf16 %v107_v3, %v106_v2  ;;  %v177_v3 = vld [vmem:[%s1469_s1] sm:$0x3]  ;;  %s1101_s1 = smov 80  }
 0x11f   :  { %vm234_vm12 = vcmp.gt.f32.partialorder %v177_v3, 0.0  ;;  %v232_v31 = vrot.slane %v177_v3, 1 }
 0x120   :  { %994 = vmatmul.msk.bf16.vlgmr.msra.gmra.mxu0 %vm40_vm0, %v109_v4  ;;  %v236_v4 = vsel %vm234_vm12, 1, %v1099_v28 }
 0x121   :  { %vm235_vm15 = vcmp.gt.f32.partialorder %v232_v31, 0.0 }
 0x192   :  { %v172_v55 = vpop.f32.mrf.mxu1 }
 0x193   :  { %v173_v58 = vadd.f32 %v1188_v29, %v172_v55 }
 0x195   :  { %v440_v59 = vpack.c.bf16 %v173_v58, %v173_v58 }
 0x197   :  { %v443_v61 = vunpack.c.l.b16 %v440_v59 }
 0x199   :  { %v1253_v63 = vpack.c.b16 %v443_v61, %v443_v61 }
 0x19a   :  { %v174_v60 = vpop.f32.mrf.mxu1 }
 0x19b   :  { %v175_v62 = vadd.f32 %v1188_v29, %v174_v60 }
 0x19d   :  { %v141_v8 = vpop.f32.mrf.mxu0  ;;  %v441_v0 = vpack.c.bf16 %v175_v62, %v175_v62 }
 0x19e   :  { %v142_v9 = vadd.f32 %v1188_v29, %v141_v8 }
 0x19f   :  { %v464_v1 = vunpack.c.l.b16 %v441_v0 }
 0x1a0   :  { %v1202_v11 = vpack.c.bf16 %v142_v9, %v142_v9 }
 0x1a1   :  { %v1257_v2 = vpack.c.b16 %v464_v1, %v464_v1 }
 0x1a2   :  { %v181_v12 = vunpack.c.l.b16 %v1202_v11  ;;  %999 = vmatmul.msk.bf16.vlgmr.msrb.gmra.mxu0 %vm185_vm6, %v1202_v11 }
 0x1a4   :  { %v1207_v14 = vpack.c.b16 %v181_v12, %v181_v12 }
 0x1a5   :  { %v143_v24 = vpop.f32.mrf.mxu0 }
 0x1a6   :  { %183 = vrot.lane.b32.xlu2 %v1207_v14, %s1098_s4  ;;  %v144_v26 = vadd.f32 %v1188_v29, %v143_v24  ;;  %v238_v29 = vperm.slane %v236_v4, 0 }
 0x1a8   :  { %v1230_v27 = vpack.c.bf16 %v144_v26, %v144_v26  ;;  %vm1265_vm13 = vcmp.eq.s32.totalorder %v238_v29, 1 }
 0x1aa   :  { %v206_v38 = vunpack.c.l.b16 %v1230_v27 }
 0x1ac   :  { %v1237_v39 = vpack.c.b16 %v206_v38, %v206_v38 }
 0x1ae   :  { %295 = vrot.lane.b32.xlu2 %v1211_v16, %s1098_s4 }
 0x200   :  { %v184_v17 = vpop.permute.xlu2 %183 }
 0x201   :  { %v190_v18 = vsel %vm185_vm6, %v184_v17, 0 }
 0x202   :  { %199 = vmatpush.bf16.xpose.msra.mxu2 %v190_v18 }
 0x208   :  { %v296_v21 = vpop.permute.xlu2 %295 }
 0x209   :  { %997 = vmatmul.msk.bf16.vlgmr.msra.gmra.mxu2 %vm185_vm6, %v1202_v11  ;;  %v298_v23 = vsel %vm185_vm6, %v296_v21, 0 }
 0x20a   :  { %307 = vmatpush.bf16.xpose.msrb.mxu2 %v298_v23 }
 0x219   :  { %1000 = vmatmul.msk.bf16.vlgmr.msrb.gmra.mxu2 %vm185_vm6, %v1230_v27 }
 0x21f   :  { %v288_v32 = vpop.f32.mrf.mxu0 }
 0x220   :  { %v313_v33 = vmul.f32 0.25, %v288_v32 }
 0x222   :  { %v327_v34 = vsel %vm325_vm8, %v313_v33, -1e+09  ;;  %v237_v33 = vsel %vm235_vm15, 1, %v1099_v28 }
 0x223   :  { %v329_v35 = vsel %vm244_vm9, %v327_v34, -inf }
 0x224   :  { %330 = vmax.xlane.f32.xlu1 %v329_v35 }
 0x227   :  { %v290_v37 = vpop.f32.mrf.mxu0 }
 0x23d   :  { %208 = vrot.lane.b32.xlu1 %v1237_v39, %s1098_s4 }
 0x28c   :  { %v201_v40 = vpop.f32.mrf.mxu2 }
 0x28d   :  { %v229_v5 = vmul.f32 0.25, %v201_v40 }
 0x28f   :  { %v1271_v7 = vsel %vm1265_vm13, %v229_v5, -1e+09 }
 0x290   :  { %v245_v8 = vsel %vm244_vm9, %v1271_v7, -inf }
 0x294   :  { %v203_v42 = vpop.f32.mrf.mxu2 }
 0x297   :  { %v331_v44 = vpop.xlane.xlu1 %330 }
 0x298   :  { %v335_v45 = vsub.f32 %v327_v34, %v331_v44  ;;  %v239_v34 = vperm.slane %v237_v33, 0 }
 0x29a   :  { %v337_v47 = vmul.f32 1.442695, %v335_v45  ;;  %vm1294_vm1 = vcmp.eq.s32.totalorder %v239_v34, 1 }
 0x29c   :  { %1047 = vpow2.f32 %v337_v47  ;;  %v309_v48 = vpop.f32.mrf.mxu2 }
 0x29d   :  { %v314_v49 = vmul.f32 0.25, %v309_v48 }
 0x29f   :  { %v328_v50 = vsel %vm326_vm11, %v314_v49, -1e+09 }
 0x2a0   :  { %v332_v51 = vsel %vm244_vm9, %v328_v50, -inf }
 0x2a1   :  { %333 = vmax.xlane.f32.xlu2 %v332_v51 }
 0x2a2   :  { %v1048_v52 = vpop.eup %1047 }
 0x2a3   :  { %v341_v53 = vsel %vm244_vm9, %v1048_v52, 0.0 }
 0x2a4   :  { %v311_v54 = vpop.f32.mrf.mxu2  ;;  %342 = vadd.xlane.f32.xlu0 %v341_v53 }
 0x2af   :  { %v209_v56 = vpop.permute.xlu1 %208 }
 0x2b0   :  { %v214_v57 = vsel %vm185_vm6, %v209_v56, 0  ;;  %v1007_v56 = vld [vmem:[%s1468_s3 + $0x2] sm:$0x3] }
 0x2b1   :  { %223 = vmatpush.bf16.xpose.msra.mxu3 %v214_v57  ;;  %vm491_vm2 = vcmp.gt.f32.partialorder %v1007_v56, 0.0 }
 0x2b2   :  { %v493_v58 = vsel %vm491_vm2, 1, %v1099_v28 }
 0x2b3   :  { %v495_v59 = vperm.slane %v493_v58, 0 }
 0x2b5   :  { %vm497_vm3 = vcmp.eq.s32.totalorder %v495_v59, 1 }
 0x2b8   :  { %375 = vrot.lane.b32.xlu0 %v1211_v16, %s1100_s2  ;;  %998 = vmatmul.msk.bf16.vlgmr.msra.gmra.mxu3 %vm185_vm6, %v1230_v27 }
 0x2b9   :  { %353 = vrot.lane.b32.xlu2 %v1191_v36, %s1100_s2 }
 0x2c1   :  { %445 = vrot.lane.b32.xlu2 %v1253_v63, %s1098_s4 }
 0x2c9   :  { %466 = vrot.lane.b32.xlu2 %v1257_v2, %s1098_s4 }
 0x2f2   :  { %246 = vmax.xlane.f32.xlu2 %v245_v8 }
 0x30a   :  { %398 = vrot.lane.b32.xlu2 %v1207_v14, %s1100_s2 }
 0x312   :  { %649 = vrot.lane.b32.xlu2 %v1191_v36, %s1101_s1 }
 0x314   :  { %v334_v9 = vpop.xlane.xlu2 %333 }
 0x315   :  { %v336_v10 = vsub.f32 %v328_v50, %v334_v9 }
 0x317   :  { %v339_v12 = vmul.f32 1.442695, %v336_v10  ;;  %v343_v13 = vpop.xlane.xlu0 %342 }
 0x318   :  { %1049 = vrcp.f32 %v343_v13 }
 0x319   :  { %1051 = vpow2.f32 %v339_v12 }
 0x31a   :  { %575 = vrot.lane.b32.xlu2 %v1207_v14, %s1102_s16 }
 0x31c   :  { %v354_v15 = vpop.permute.xlu2 %353 }
 0x31d   :  { %v360_v17 = vsel %vm358_vm14, %v354_v15, 0 }
 0x31e   :  { %v1050_v18 = vpop.eup %1049  ;;  %369 = vmatpush.bf16.msrb.mxu3 %v360_v17  ;;  %v489_v17 = vrot.slane %v1007_v56, 1 }
 0x31f   :  { %v1052_v19 = vpop.eup %1051  ;;  %v349_v20 = vmul.f32 %v1050_v18, %v1048_v52 }
 0x320   :  { %v344_v21 = vsel %vm244_vm9, %v1052_v19, 0.0  ;;  %vm492_vm4 = vcmp.gt.f32.partialorder %v489_v17, 0.0 }
 0x321   :  { %345 = vadd.xlane.f32.xlu1 %v344_v21  ;;  %v351_v22 = vpack.c.bf16 %v349_v20, %v349_v20 }
 0x322   :  { %577 = vrot.lane.b32.xlu2 %v1207_v14, %s1101_s1 }
 0x323   :  { %1001 = vmatmul.msk.bf16.vlgmr.msrb.gmra.mxu3 %vm244_vm9, %v351_v22 }
 0x324   :  { %v446_v23 = vpop.permute.xlu2 %445 }
 0x325   :  { %v448_v24 = vsel %vm185_vm6, %v446_v23, 0 }
 0x326   :  { %457 = vmatpush.bf16.xpose.msra.mxu3 %v448_v24 }
 0x32a   :  { %600 = vrot.lane.b32.xlu2 %v1237_v39, %s1101_s1  ;;  %v376_v25 = vpop.permute.xlu0 %375 }
 0x32b   :  { %v381_v26 = vsel %vm358_vm14, %v376_v25, 0 }
 0x32c   :  { %390 = vmatpush.bf16.msra.mxu0 %v381_v26  ;;  %v467_v30 = vpop.permute.xlu2 %466 }
 0x32d   :  { %v469_v32 = vsel %vm185_vm6, %v467_v30, 0 }
 0x330   :  { %478 = vmatpush.bf16.xpose.msrb.mxu0 %v469_v32 }
 0x333   :  { %1005 = vmatmul.msk.bf16.vlgmr.msra.gmra.mxu3 %vm185_vm6, %v1202_v11 }
 0x33b   :  { %v225_v35 = vpop.f32.mrf.mxu3 }
 0x33c   :  { %v230_v38 = vmul.f32 0.25, %v225_v35 }
 0x33e   :  { %v243_v40 = vsel %vm1294_vm1, %v230_v38, -1e+09 }
 0x33f   :  { %v248_v41 = vsel %vm244_vm9, %v243_v40, -inf }
 0x340   :  { %249 = vmax.xlane.f32.xlu1 %v248_v41 }
 0x343   :  { %v227_v42 = vpop.f32.mrf.mxu3 }
 0x365   :  { %v247_v43 = vpop.xlane.xlu2 %246 }
 0x366   :  { %v251_v3 = vsub.f32 %v1271_v7, %v247_v43 }
 0x368   :  { %v253_v5 = vmul.f32 1.442695, %v251_v3 }
 0x36d   :  { %v399_v44 = vpop.permute.xlu2 %398 }
 0x36e   :  { %v404_v11 = vsel %vm358_vm14, %v399_v44, 0 }
 0x36f   :  { %413 = vmatpush.bf16.msrb.mxu1 %v404_v11 }
 0x375   :  { %v1302_v45 = vpop.permute.xlu2 %649 }
 0x37d   :  { %v1304_v46 = vpop.permute.xlu2 %575 }
 0x385   :  { %v578_v47 = vpop.permute.xlu2 %577 }
 0x386   :  { %v583_v48 = vsel %vm185_vm6, %v578_v47, 0 }
 0x387   :  { %592 = vmatpush.bf16.xpose.msrb.mxu3 %v583_v48 }
 0x38d   :  { %v601_v52 = vpop.permute.xlu2 %600 }
 0x38e   :  { %1010 = vmatmul.msk.bf16.vlgmr.msrb.gmra.mxu3 %vm185_vm6, %v1304_v46  ;;  %v606_v54 = vsel %vm185_vm6, %v601_v52, 0 }
 0x394   :  { %v346_v49 = vpop.xlane.xlu1 %345 }
 0x395   :  { %1053 = vrcp.f32 %v346_v49 }
 0x39b   :  { %v1054_v50 = vpop.eup %1053 }
 0x39c   :  { %v350_v51 = vmul.f32 %v1054_v50, %v1052_v19  ;;  %v494_v19 = vsel %vm492_vm4, 1, %v1099_v28 }
 0x39d   :  { %v496_v20 = vperm.slane %v494_v19, 0 }
 0x39e   :  { %v352_v53 = vpack.c.bf16 %v350_v51, %v350_v51 }
 0x39f   :  { %vm498_vm5 = vcmp.eq.s32.totalorder %v496_v20, 1  ;;  %v687_v20 = vld [vmem:[%s1468_s3] sm:$0x3] }
 0x3a0   :  { %1002 = vmatmul.msk.bf16.vlgmr.msra.gmra.mxu0 %vm244_vm9, %v352_v53  ;;  %vm691_vm8 = vcmp.gt.f32.partialorder %v687_v20, 0.0 }
 0x3a1   :  { %615 = vmatpush.bf16.xpose.msra.mxu0 %v606_v54 }
 0x3a6   :  { %v1311_v55 = vpop.f32.mrf.mxu3 }
 0x3a7   :  { %v396_v59 = vmul.f32 0.5, %v1311_v55 }
 0x3ae   :  { %v373_v57 = vpop.f32.mrf.mxu3 }
 0x3b0   :  { %1006 = vmatmul.msk.bf16.vlgmr.msrb.gmra.mxu0 %vm185_vm6, %v1230_v27 }
 0x3b3   :  { %v250_v60 = vpop.xlane.xlu1 %249 }
 0x3b4   :  { %v252_v61 = vsub.f32 %v243_v40, %v250_v60 }
 0x3b6   :  { %v255_v62 = vmul.f32 1.442695, %v252_v61  ;;  %v459_v0 = vpop.f32.mrf.mxu3 }
 0x3b7   :  { %v484_v1 = vmul.f32 0.25, %v459_v0 }
 0x3b8   :  { %1055 = vpow2.f32 %v255_v62 }
 0x3b9   :  { %v499_v4 = vsel %vm497_vm3, %v484_v1, -1e+09  ;;  %1057 = vpow2.f32 %v253_v5 }
 0x3ba   :  { %v501_v29 = vsel %vm244_vm9, %v499_v4, -inf }
 0x3bb   :  { %502 = vmax.xlane.f32.xlu1 %v501_v29 }
 0x3be   :  { %v461_v8 = vpop.f32.mrf.mxu3  ;;  %v1056_v9 = vpop.eup %1055 }
 0x3bf   :  { %v260_v27 = vsel %vm244_vm9, %v1056_v9, 0.0  ;;  %v1058_v10 = vpop.eup %1057 }
 0x3c0   :  { %v257_v12 = vsel %vm244_vm9, %v1058_v10, 0.0 }
 0x3c3   :  { %261 = vadd.xlane.f32.xlu1 %v260_v27 }
 0x3cb   :  { %258 = vadd.xlane.f32.xlu1 %v257_v12 }
 0x3e4   :  { %419 = vrot.lane.b32.xlu1 %v1237_v39, %s1100_s2 }
 0x3ec   :  { %546 = vrot.lane.b32.xlu1 %v1257_v2, %s1100_s2 }
 0x3f4   :  { %667 = vrot.lane.b32.xlu1 %v1211_v16, %s1101_s1 }
 0x3fc   :  { %598 = vrot.lane.b32.xlu1 %v1237_v39, %s1102_s16 }
 0x411   :  { %v1331_v7 = vpop.f32.mrf.mxu3 }
 0x419   :  { %v596_v13 = vpop.f32.mrf.mxu3 }
 0x41d   :  { %v392_v15 = vpop.f32.mrf.mxu0 }
 0x41e   :  { %v397_v0 = vmul.f32 0.5, %v392_v15  ;;  %v652_v15 = vsel %vm185_vm6, %v1302_v45, 0 }
 0x425   :  { %v394_v18 = vpop.f32.mrf.mxu0 }
 0x42d   :  { %v480_v21 = vpop.f32.mrf.mxu0 }
 0x42e   :  { %v485_v22 = vmul.f32 0.25, %v480_v21  ;;  %v503_v23 = vpop.xlane.xlu1 %502 }
 0x42f   :  { %v507_v24 = vsub.f32 %v499_v4, %v503_v23  ;;  %v689_v23 = vrot.slane %v687_v20, 1 }
 0x430   :  { %v500_v25 = vsel %vm498_vm5, %v485_v22, -1e+09 }
 0x431   :  { %v509_v26 = vmul.f32 1.442695, %v507_v24  ;;  %v504_v30 = vsel %vm244_vm9, %v500_v25, -inf  ;;  %vm692_vm7 = vcmp.gt.f32.partialorder %v689_v23, 0.0 }
 0x432   :  { %505 = vmax.xlane.f32.xlu0 %v504_v30 }
 0x433   :  { %1059 = vpow2.f32 %v509_v26 }
 0x435   :  { %v482_v31 = vpop.f32.mrf.mxu0 }
 0x436   :  { %v262_v32 = vpop.xlane.xlu1 %261  ;;  %v694_v31 = vsel %vm692_vm7, 1, %v1099_v28 }
 0x439   :  { %v1060_v33 = vpop.eup %1059 }
 0x43a   :  { %v513_v34 = vsel %vm244_vm9, %v1060_v33, 0.0 }
 0x43b   :  { %514 = vadd.xlane.f32.xlu0 %v513_v34 }
 0x43e   :  { %v259_v35 = vpop.xlane.xlu1 %258 }
 0x43f   :  { %1061 = vrcp.f32 %v259_v35  ;;  %v693_v35 = vsel %vm691_vm8, 1, %v1099_v28 }
 0x440   :  { %1063 = vrcp.f32 %v262_v32 }
 0x445   :  { %v1062_v38 = vpop.eup %1061 }
 0x446   :  { %v265_v40 = vmul.f32 %v1062_v38, %v1058_v10  ;;  %v1064_v42 = vpop.eup %1063 }
 0x447   :  { %v266_v43 = vmul.f32 %v1064_v42, %v1056_v9 }
 0x448   :  { %v267_v41 = vpack.c.bf16 %v265_v40, %v265_v40 }
 0x449   :  { %v268_v47 = vpack.c.bf16 %v266_v43, %v266_v43 }
 0x44a   :  { %1003 = vmatmul.msk.bf16.vlgmr.msrb.gmra.mxu1 %vm244_vm9, %v267_v41  ;;  %v695_v41 = vperm.slane %v693_v35, 0 }
 0x44c   :  { %vm697_vm11 = vcmp.eq.s32.totalorder %v695_v41, 1 }
 0x456   :  { %v420_v44 = vpop.permute.xlu1 %419 }
 0x457   :  { %v425_v11 = vsel %vm358_vm14, %v420_v44, 0 }
 0x458   :  { %434 = vmatpush.bf16.msra.mxu2 %v425_v11 }
 0x45b   :  { %1004 = vmatmul.msk.bf16.vlgmr.msra.gmra.mxu2 %vm244_vm9, %v268_v47 }
 0x45e   :  { %v547_v48 = vpop.permute.xlu1 %546 }
 0x45f   :  { %v552_v49 = vsel %vm358_vm14, %v547_v48, 0 }
 0x460   :  { %561 = vmatpush.bf16.msrb.mxu2 %v552_v49 }
 0x466   :  { %v668_v50 = vpop.permute.xlu1 %667 }
 0x467   :  { %v670_v51 = vsel %vm185_vm6, %v668_v50, 0 }
 0x468   :  { %679 = vmatpush.bf16.xpose.msra.mxu2 %v670_v51 }
 0x46e   :  { %v1341_v52 = vpop.permute.xlu1 %598 }
 0x46f   :  { %1011 = vmatmul.msk.bf16.vlgmr.msra.gmra.mxu0 %vm185_vm6, %v1341_v52 }
 0x4a5   :  { %v506_v53 = vpop.xlane.xlu0 %505 }
 0x4a6   :  { %v508_v54 = vsub.f32 %v500_v25, %v506_v53 }
 0x4a8   :  { %v511_v56 = vmul.f32 1.442695, %v508_v54 }
 0x4aa   :  { %1065 = vpow2.f32 %v511_v56 }
 0x4ae   :  { %v515_v8 = vpop.xlane.xlu0 %514 }
 0x4b0   :  { %v1066_v57 = vpop.eup %1065 }
 0x4b1   :  { %v516_v58 = vsel %vm244_vm9, %v1066_v57, 0.0 }
 0x4b2   :  { %517 = vadd.xlane.f32.xlu0 %v516_v58 }
 0x4c6   :  { %525 = vrot.lane.b32.xlu0 %v1253_v63, %s1100_s2 }
 0x4c7   :  { %v415_v60 = vpop.f32.mrf.mxu1 }
 0x4c8   :  { %v416_v61 = vadd.f32 %v415_v60, %v396_v59 }
 0x4cf   :  { %v417_v62 = vpop.f32.mrf.mxu1 }
 0x4de   :  { %v436_v1 = vpop.f32.mrf.mxu2 }
 0x4df   :  { %v437_v3 = vadd.f32 %v436_v1, %v397_v0 }
 0x4e6   :  { %v438_v4 = vpop.f32.mrf.mxu2 }
 0x4ec   :  { %v617_v29 = vpop.f32.mrf.mxu0 }
 0x4ed   :  { %v622_v51 = vmul.f32 0.25, %v617_v29 }
 0x4ef   :  { %v624_v53 = vsel %vm1294_vm1, %v622_v51, -1e+09 }
 0x4f0   :  { %v628_v54 = vsel %vm244_vm9, %v624_v53, -inf }
 0x4f4   :  { %v619_v5 = vpop.f32.mrf.mxu0 }
 0x525   :  { %v518_v9 = vpop.xlane.xlu0 %517 }
 0x526   :  { %1067 = vrcp.f32 %v518_v9 }
 0x527   :  { %1069 = vrcp.f32 %v515_v8  ;;  %v621_v8 = vmul.f32 0.25, %v1331_v7 }
 0x52c   :  { %v1068_v27 = vpop.eup %1067 }
 0x52d   :  { %v522_v10 = vmul.f32 %v1068_v27, %v1066_v57  ;;  %v1070_v55 = vpop.eup %1069  ;;  %v623_v27 = vsel %vm1265_vm13, %v621_v8, -1e+09 }
 0x52e   :  { %v521_v13 = vmul.f32 %v1070_v55, %v1060_v33  ;;  %v696_v33 = vperm.slane %v694_v31, 0 }
 0x52f   :  { %v524_v12 = vpack.c.bf16 %v522_v10, %v522_v10  ;;  %v625_v10 = vsel %vm244_vm9, %v623_v27, -inf }
 0x530   :  { %v523_v19 = vpack.c.bf16 %v521_v13, %v521_v13  ;;  %vm698_vm10 = vcmp.eq.s32.totalorder %v696_v33, 1 }
 0x531   :  { %1009 = vmatmul.msk.bf16.vlgmr.msrb.gmra.mxu2 %vm244_vm9, %v524_v12 }
 0x538   :  { %v526_v17 = vpop.permute.xlu0 %525 }
 0x539   :  { %v531_v18 = vsel %vm358_vm14, %v526_v17, 0 }
 0x53a   :  { %540 = vmatpush.bf16.msra.mxu1 %v531_v18 }
 0x53d   :  { %1008 = vmatmul.msk.bf16.vlgmr.msra.gmra.mxu1 %vm244_vm9, %v523_v19 }
 0x53e   :  { %661 = vmatpush.bf16.xpose.msrb.mxu1 %v652_v15 }
 0x541   :  { %1013 = vmatmul.msk.bf16.vlgmr.msra.gmra.mxu2 %vm185_vm6, %v1341_v52 }
 0x54d   :  { %1012 = vmatmul.msk.bf16.vlgmr.msrb.gmra.mxu1 %vm185_vm6, %v1304_v46 }
 0x5b4   :  { %v563_v21 = vpop.f32.mrf.mxu2 }
 0x5b5   :  { %v568_v22 = vmul.f32 0.5, %v563_v21 }
 0x5b7   :  { %v1361_v24 = vadd.f32 %v568_v22, %v437_v3 }
 0x5ba   :  { %v542_v45 = vpop.f32.mrf.mxu1 }
 0x5bb   :  { %v567_v25 = vmul.f32 0.5, %v542_v45 }
 0x5bc   :  { %v565_v26 = vpop.f32.mrf.mxu2 }
 0x5bd   :  { %v1363_v30 = vadd.f32 %v567_v25, %v416_v61 }
 0x5bf   :  { %v574_v32 = vpack.c.bf16 %v1361_v24, %v1363_v30 }
 0x5c2   :  { %v544_v34 = vpop.f32.mrf.mxu1 }
 0x5c4   :  { %v681_v38 = vpop.f32.mrf.mxu2 }
 0x5c5   :  { %v686_v40 = vmul.f32 0.25, %v681_v38 }
 0x5c7   :  { %v700_v42 = vsel %vm698_vm10, %v686_v40, -1e+09 }
 0x5c8   :  { %v704_v43 = vsel %vm244_vm9, %v700_v42, -inf }
 0x5c9   :  { %705 = vmax.xlane.f32.xlu0 %v704_v43 }
 0x5ca   :  { %v663_v44 = vpop.f32.mrf.mxu1 }
 0x5cb   :  { %v685_v11 = vmul.f32 0.25, %v663_v44 }
 0x5cc   :  { %v683_v47 = vpop.f32.mrf.mxu2 }
 0x5cd   :  { %v699_v48 = vsel %vm697_vm11, %v685_v11, -1e+09 }
 0x5ce   :  { %v701_v49 = vsel %vm244_vm9, %v699_v48, -inf }
 0x5cf   :  { %702 = vmax.xlane.f32.xlu1 %v701_v49 }
 0x5d2   :  { %v665_v50 = vpop.f32.mrf.mxu1 }
 0x5dd   :  { %725 = vrot.lane.b32.xlu0 %v1191_v36, %s1103_s21 }
 0x5e5   :  { %829 = vrot.lane.b32.xlu0 %v1257_v2, %s1101_s1 }
 0x60f   :  { %629 = vmax.xlane.f32.xlu0 %v628_v54 }
 0x63c   :  { %v706_v56 = vpop.xlane.xlu0 %705 }
 0x63d   :  { %v708_v57 = vsub.f32 %v700_v42, %v706_v56 }
 0x63f   :  { %v711_v58 = vmul.f32 1.442695, %v708_v57 }
 0x641   :  { %1071 = vpow2.f32 %v711_v58 }
 0x642   :  { %v703_v59 = vpop.xlane.xlu1 %702 }
 0x643   :  { %v707_v60 = vsub.f32 %v699_v48, %v703_v59 }
 0x645   :  { %v709_v61 = vmul.f32 1.442695, %v707_v60 }
 0x647   :  { %v1072_v62 = vpop.eup %1071  ;;  %1073 = vpow2.f32 %v709_v61 }
 0x648   :  { %v716_v36 = vsel %vm244_vm9, %v1072_v62, 0.0 }
 0x649   :  { %717 = vadd.xlane.f32.xlu1 %v716_v36 }
 0x64d   :  { %v1074_v0 = vpop.eup %1073 }
 0x64e   :  { %v713_v1 = vsel %vm244_vm9, %v1074_v0, 0.0 }
 0x64f   :  { %714 = vadd.xlane.f32.xlu2 %v713_v1  ;;  %v726_v37 = vpop.permute.xlu0 %725 }
 0x650   :  { %v731_v3 = vsel %vm358_vm14, %v726_v37, 0 }
 0x651   :  { %740 = vmatpush.bf16.msra.mxu3 %v731_v3 }
 0x657   :  { %v830_v4 = vpop.permute.xlu0 %829 }
 0x658   :  { %v832_v23 = vsel %vm185_vm6, %v830_v4, 0 }
 0x662   :  { %746 = vrot.lane.b32.xlu1 %v1211_v16, %s1103_s21 }
 0x667   :  { %811 = vrot.lane.b32.xlu2 %v1253_v63, %s1101_s1 }
 0x682   :  { %v630_v29 = vpop.xlane.xlu0 %629 }
 0x683   :  { %v632_v5 = vsub.f32 %v624_v53, %v630_v29 }
 0x685   :  { %v635_v9 = vmul.f32 1.442695, %v632_v5 }
 0x687   :  { %1075 = vpow2.f32 %v635_v9 }
 0x68c   :  { %626 = vmax.xlane.f32.xlu1 %v625_v10 }
 0x68d   :  { %v1076_v12 = vpop.eup %1075 }
 0x68e   :  { %v640_v55 = vsel %vm244_vm9, %v1076_v12, 0.0 }
 0x694   :  { %641 = vadd.xlane.f32.xlu1 %v640_v55 }
 0x6ad   :  { %790 = vrot.lane.b32.xlu1 %v1237_v39, %s1103_s21  ;;  %v571_v39 = vld [vmem:[%s1470_s8] sm:$0xff] }
 0x6b5   :  { %887 = vrot.lane.b32.xlu1 %v1253_v63, %s1103_s21  ;;  %v572_v63 = vld [vmem:[%s1470_s8 + $0x8] sm:$0xff] }
 0x6b6   :  { %v573_v45 = vpack.c.bf16 %v572_v63, %v571_v39 }
 0x6bc   :  { %v718_v7 = vpop.xlane.xlu1 %717 }
 0x6c2   :  { %v715_v16 = vpop.xlane.xlu2 %714 }
 0x6c3   :  { %1077 = vrcp.f32 %v715_v16 }
 0x6c4   :  { %1079 = vrcp.f32 %v718_v7 }
 0x6c9   :  { %v1078_v13 = vpop.eup %1077 }
 0x6ca   :  { %v721_v6 = vmul.f32 %v1078_v13, %v1074_v0  ;;  %v812_v17 = vpop.permute.xlu2 %811  ;;  %v1080_v19 = vpop.eup %1079 }
 0x6cb   :  { %v814_v18 = vsel %vm185_vm6, %v812_v17, 0  ;;  %v722_v20 = vmul.f32 %v1080_v19, %v1072_v62 }
 0x6cc   :  { %v723_v15 = vpack.c.bf16 %v721_v6, %v721_v6  ;;  %823 = vmatpush.bf16.xpose.msrb.mxu3 %v814_v18 }
 0x6cd   :  { %v724_v25 = vpack.c.bf16 %v722_v20, %v722_v20 }
 0x6ce   :  { %1014 = vmatmul.msk.bf16.vlgmr.msra.gmra.mxu3 %vm244_vm9, %v723_v15 }
 0x6d4   :  { %v747_v21 = vpop.permute.xlu1 %746 }
 0x6d5   :  { %v752_v22 = vsel %vm358_vm14, %v747_v21, 0 }
 0x6d6   :  { %761 = vmatpush.bf16.msrb.mxu0 %v752_v22 }
 0x6d9   :  { %1015 = vmatmul.msk.bf16.vlgmr.msrb.gmra.mxu0 %vm244_vm9, %v724_v25 }
 0x6da   :  { %841 = vmatpush.bf16.xpose.msra.mxu0 %v832_v23 }
 0x6de   :  { %1018 = vmatmul.msk.bf16.vlgmr.msrb.gmra.mxu3 %vm185_vm6, %v1304_v46 }
 0x6e2   :  { %964 = vmatpush.bf16.msrb.mxu0 %v573_v45 }
 0x6e9   :  { %1019 = vmatmul.msk.bf16.vlgmr.msra.gmra.mxu0 %vm185_vm6, %v1341_v52  ;;  %v1020_v52 = vld [vmem:[%s1468_s3 + $0x2] sm:$0x3] }
 0x6ea   :  { %vm853_vm12 = vcmp.gt.f32.partialorder %v1020_v52, 0.0  ;;  %v851_v30 = vrot.slane %v1020_v52, 1 }
 0x6eb   :  { %v855_v41 = vsel %vm853_vm12, 1, %v1099_v28 }
 0x6ec   :  { %vm854_vm13 = vcmp.gt.f32.partialorder %v851_v30, 0.0  ;;  %v857_v43 = vperm.slane %v855_v41, 0 }
 0x6ed   :  { %v856_v11 = vsel %vm854_vm13, 1, %v1099_v28 }
 0x6ee   :  { %vm859_vm15 = vcmp.eq.s32.totalorder %v857_v43, 1  ;;  %v858_v50 = vperm.slane %v856_v11, 0 }
 0x6f0   :  { %vm860_vm1 = vcmp.eq.s32.totalorder %v858_v50, 1 }
 0x6f9   :  { %1024 = vmatmul.msk.bf16.vlgmr.msrb.gmra.mxu0 %vm185_vm6, %v574_v32 }
 0x6ff   :  { %v627_v26 = vpop.xlane.xlu1 %626 }
 0x700   :  { %v631_v42 = vsub.f32 %v623_v27, %v627_v26 }
 0x702   :  { %v633_v47 = vmul.f32 1.442695, %v631_v42 }
 0x707   :  { %v642_v31 = vpop.xlane.xlu1 %641 }
 0x708   :  { %1081 = vrcp.f32 %v642_v31 }
 0x709   :  { %1083 = vpow2.f32 %v633_v47 }
 0x70e   :  { %v1082_v33 = vpop.eup %1081 }
 0x70f   :  { %v646_v34 = vmul.f32 %v1082_v33, %v1076_v12  ;;  %v1084_v59 = vpop.eup %1083 }
 0x710   :  { %v637_v28 = vsel %vm244_vm9, %v1084_v59, 0.0 }
 0x711   :  { %v648_v40 = vpack.c.bf16 %v646_v34, %v646_v34  ;;  %v933_v34 = vld [vmem:[%s1470_s8 + $0x10] sm:$0xff] }
 0x71f   :  { %v791_v35 = vpop.permute.xlu1 %790 }
 0x720   :  { %v796_v38 = vsel %vm358_vm14, %v791_v35, 0  ;;  %v934_v35 = vld [vmem:[%s1470_s8 + $0x18] sm:$0xff] }
 0x721   :  { %805 = vmatpush.bf16.msrb.mxu2 %v796_v38  ;;  %v935_v38 = vpack.c.bf16 %v934_v35, %v933_v34 }
 0x723   :  { %947 = vmatpush.bf16.msra.mxu3 %v935_v38 }
 0x724   :  { %1017 = vmatmul.msk.bf16.vlgmr.msrb.gmra.mxu2 %vm244_vm9, %v648_v40 }
 0x727   :  { %v888_v10 = vpop.permute.xlu1 %887 }
 0x728   :  { %v893_v7 = vsel %vm358_vm14, %v888_v10, 0 }
 0x751   :  { %v1415_v46 = vpop.f32.mrf.mxu3 }
 0x752   :  { %v767_v21 = vmul.f32 0.5, %v1415_v46 }
 0x756   :  { %v763_v24 = vpop.f32.mrf.mxu0 }
 0x757   :  { %v768_v62 = vmul.f32 0.5, %v763_v24 }
 0x759   :  { %v744_v32 = vpop.f32.mrf.mxu3 }
 0x75e   :  { %v765_v44 = vpop.f32.mrf.mxu0 }
 0x75f   :  { %v973_v44 = vld [vmem:[%s1471_s9] sm:$0x1] }
 0x760   :  { %v974_v11 = vmul.f32 2.0, %v973_v44 }
 0x761   :  { %v825_v48 = vpop.f32.mrf.mxu3 }
 0x762   :  { %v847_v49 = vmul.f32 0.25, %v825_v48  ;;  %v976_v50 = vperm.slane %v974_v11, 0 }
 0x764   :  { %v861_v51 = vsel %vm859_vm15, %v847_v49, -1e+09 }
 0x765   :  { %v863_v53 = vsel %vm244_vm9, %v861_v51, -inf }
 0x766   :  { %864 = vmax.xlane.f32.xlu0 %v863_v53  ;;  %v843_v54 = vpop.f32.mrf.mxu0 }
 0x767   :  { %v848_v56 = vmul.f32 0.25, %v843_v54 }
 0x769   :  { %v827_v57 = vpop.f32.mrf.mxu3  ;;  %v862_v58 = vsel %vm860_vm1, %v848_v56, -1e+09 }
 0x76a   :  { %v866_v60 = vsel %vm244_vm9, %v862_v58, -inf }
 0x76b   :  { %867 = vmax.xlane.f32.xlu2 %v866_v60 }
 0x76e   :  { %638 = vadd.xlane.f32.xlu0 %v637_v28  ;;  %v845_v61 = vpop.f32.mrf.mxu0 }
 0x776   :  { %v966_v47 = vpop.f32.mrf.mxu0 }
 0x77e   :  { %v968_v56 = vpop.f32.mrf.mxu0 }
 0x783   :  { %769 = vrot.lane.b32.xlu2 %v1207_v14, %s1103_s21 }
 0x7a7   :  { %v807_v36 = vpop.f32.mrf.mxu2 }
 0x7a8   :  { %v808_v0 = vadd.f32 %v807_v36, %v768_v62 }
 0x7af   :  { %v809_v1 = vpop.f32.mrf.mxu2 }
 0x7d9   :  { %v865_v37 = vpop.xlane.xlu0 %864 }
 0x7da   :  { %v869_v3 = vsub.f32 %v861_v51, %v865_v37  ;;  %v1095_v51 = vld [vmem:[%s1462_s0] sm:$0xff] }
 0x7dc   :  { %v871_v4 = vmul.f32 1.442695, %v869_v3 }
 0x7de   :  { %1085 = vpow2.f32 %v871_v4  ;;  %v868_v29 = vpop.xlane.xlu2 %867 }
 0x7df   :  { %v870_v5 = vsub.f32 %v862_v58, %v868_v29 }
 0x7e1   :  { %v873_v8 = vmul.f32 1.442695, %v870_v5  ;;  %v639_v9 = vpop.xlane.xlu0 %638 }
 0x7e2   :  { %1087 = vrcp.f32 %v639_v9 }
 0x7e3   :  { %1089 = vpow2.f32 %v873_v8 }
 0x7e4   :  { %v1086_v27 = vpop.eup %1085 }
 0x7e5   :  { %v875_v12 = vsel %vm244_vm9, %v1086_v27, 0.0 }
 0x7e6   :  { %876 = vadd.xlane.f32.xlu0 %v875_v12  ;;  %v770_v14 = vpop.permute.xlu2 %769 }
 0x7e7   :  { %v775_v55 = vsel %vm358_vm14, %v770_v14, 0 }
 0x7e8   :  { %v1088_v16 = vpop.eup %1087  ;;  %784 = vmatpush.bf16.msra.mxu1 %v775_v55 }
 0x7e9   :  { %v645_v13 = vmul.f32 %v1088_v16, %v1084_v59  ;;  %v1090_v6 = vpop.eup %1089  ;;  %v1096_v59 = vld [vmem:[%s1462_s0 + $0x8] sm:$0xff] }
 0x7ea   :  { %v878_v18 = vsel %vm244_vm9, %v1090_v6, 0.0 }
 0x7eb   :  { %v647_v17 = vpack.c.bf16 %v645_v13, %v645_v13 }
 0x7ec   :  { %902 = vmatpush.bf16.msrb.mxu1 %v893_v7 }
 0x7ed   :  { %1016 = vmatmul.msk.bf16.vlgmr.msra.gmra.mxu1 %vm244_vm9, %v647_v17 }
 0x7ee   :  { %879 = vadd.xlane.f32.xlu0 %v878_v18 }
 0x802   :  { %908 = vrot.lane.b32.xlu0 %v1257_v2, %s1103_s21 }
 0x859   :  { %v877_v15 = vpop.xlane.xlu0 %876 }
 0x85a   :  { %1091 = vrcp.f32 %v877_v15 }
 0x860   :  { %v1092_v19 = vpop.eup %1091 }
 0x861   :  { %v883_v20 = vmul.f32 %v1092_v19, %v1086_v27  ;;  %v880_v63 = vpop.xlane.xlu0 %879 }
 0x862   :  { %1093 = vrcp.f32 %v880_v63 }
 0x863   :  { %v885_v39 = vpack.c.bf16 %v883_v20, %v883_v20 }
 0x865   :  { %1021 = vmatmul.msk.bf16.vlgmr.msrb.gmra.mxu1 %vm244_vm9, %v885_v39 }
 0x868   :  { %v1094_v45 = vpop.eup %1093 }
 0x869   :  { %v884_v26 = vmul.f32 %v1094_v45, %v1090_v6 }
 0x86a   :  { %v786_v22 = vpop.f32.mrf.mxu1 }
 0x86b   :  { %v787_v23 = vadd.f32 %v786_v22, %v767_v21  ;;  %v886_v2 = vpack.c.bf16 %v884_v26, %v884_v26 }
 0x872   :  { %v788_v25 = vpop.f32.mrf.mxu1 }
 0x874   :  { %v909_v31 = vpop.permute.xlu0 %908 }
 0x875   :  { %v914_v33 = vsel %vm358_vm14, %v909_v31, 0 }
 0x876   :  { %923 = vmatpush.bf16.msra.mxu2 %v914_v33 }
 0x879   :  { %1022 = vmatmul.msk.bf16.vlgmr.msra.gmra.mxu2 %vm244_vm9, %v886_v2 }
 0x8e2   :  { %v904_v40 = vpop.f32.mrf.mxu1 }
 0x8e3   :  { %v929_v52 = vmul.f32 0.5, %v904_v40 }
 0x8e5   :  { %v931_v32 = vadd.f32 %v929_v52, %v787_v23 }
 0x8ea   :  { %v906_v46 = vpop.f32.mrf.mxu1 }
 0x8fc   :  { %v925_v24 = vpop.f32.mrf.mxu2 }
 0x8fd   :  { %v930_v30 = vmul.f32 0.5, %v925_v24 }
 0x8ff   :  { %v932_v41 = vadd.f32 %v930_v30, %v808_v0 }
 0x901   :  { %v936_v42 = vpack.c.bf16 %v932_v41, %v931_v32 }
 0x903   :  { %1023 = vmatmul.msk.bf16.vlgmr.msra.gmra.mxu3 %vm185_vm6, %v936_v42 }
 0x904   :  { %v927_v43 = vpop.f32.mrf.mxu2 }
 0x986   :  { %v949_v48 = vpop.f32.mrf.mxu3 }
 0x987   :  { %v967_v49 = vadd.f32 %v966_v47, %v949_v48 }
 0x989   :  { %v971_v53 = vadd.f32 %v1095_v51, %v967_v49 }
 0x98b   :  { %v978_v54 = vadd.f32 %v976_v50, %v971_v53 }
 0x98d   :  { %980 = vst.msk [vmem:[%s1472_s10] sm:$0xff] %vm40_vm0, %v978_v54 }
 0x98e   :  { %v951_v57 = vpop.f32.mrf.mxu3 }
 0x98f   :  { %v969_v58 = vadd.f32 %v968_v56, %v951_v57 }
 0x991   :  { %v972_v60 = vadd.f32 %v1096_v59, %v969_v58 }
 0x993   :  { %v979_v28 = vadd.f32 %v976_v50, %v972_v60 }
 0x995   :  { %981 = vst.msk [vmem:[%s1472_s10 + $0x8] sm:$0xff] %vm40_vm0, %v979_v28 }

</bundles_post_ra>
